<compile_context>
chip_gen: v5e
topology: v5e:2x2
jax: 0.10.0
libtpu: 0.0.40
codegen_flags: <defaults>
</compile_context>

<pallas_src>
import math
from functools import partial

import jax
import jax.numpy as jnp
from jax import lax
from jax.experimental import pallas as pl
from jax.experimental.pallas import tpu as pltpu

F_IN = 263          # nn.Linear(263, latent_dim)
K_PAD = 384         # 263 padded up to a 128-lane multiple
NTOK = 2            # latent_size * 2 global motion tokens prepended


def _layer_norm(x, w, b, eps=1e-5):
    x = x.astype(jnp.float32)
    mu = jnp.mean(x, axis=-1, keepdims=True)
    var = jnp.mean((x - mu) ** 2, axis=-1, keepdims=True)
    return (x - mu) * lax.rsqrt(var + eps) * w + b


def _gelu(x):  # exact (erf) GELU = torch.nn.functional.gelu default
    return 0.5 * x * (1.0 + lax.erf(x * (1.0 / math.sqrt(2.0))))


# ----------------------------------------------------------------------------
# Fused kernel: skel embedding (layer 0) + post-norm transformer layer (per grid
# step) + final LayerNorm + classifier head (last layer).
# ----------------------------------------------------------------------------
def style_cls_kernel(
    feats_ref,                   # (bt, T, Kp)   bf16
    mask_ref,                    # (B, S)        f32  (unused when use_mask=False)
    skel_w_ref, skel_b_ref,      # (Kp, D) bf16 / (1, D) f32
    tok_ref,                     # (NTOK, D)     f32
    pe_ref,                      # (S, D)        f32
    qkv_w_ref,                   # (3, D, D)     bf16   this layer's block
    qkv_b_ref,                   # (3, 1, D)     f32
    out_w_ref, out_b_ref,        # (D, D) bf16 / (1, D) f32
    ln1_w_ref, ln1_b_ref,        # (1, D) f32
    ffn_w1_ref, ffn_b1_ref,      # (D, FF) bf16 / (1, FF) f32
    ffn_w2_ref, ffn_b2_ref,      # (FF, D) bf16 / (1, D) f32
    ln2_w_ref, ln2_b_ref,        # (1, D) f32
    enc_ln_w_ref, enc_ln_b_ref,  # (1, D) f32
    cls_w_ref, cls_b_ref,        # (D, C) bf16 / (1, C) f32
    out_ref,                     # (bt, 1, C)    f32
    h_ref,                       # scratch (bt*S, D) bf16  residual stream
    *, num_heads, use_mask,
):
    layer = pl.program_id(1)
    n_layers = pl.num_programs(1)
    bt, T, Kp = feats_ref.shape
    D = skel_w_ref.shape[1]
    S = pe_ref.shape[0]
    H = num_heads
    dh = D // H
    rows = bt * S
    scale = 1.0 / math.sqrt(dh)
    bf16 = jnp.bfloat16

    # ---- layer 0 of this batch tile: skel embedding + token concat + pos. emb.
    @pl.when(layer == 0)
    def _():
        xf = feats_ref[...].reshape(bt * T, Kp)
        x = (jnp.dot(xf, skel_w_ref[...], preferred_element_type=jnp.float32)
             + skel_b_ref[...]).reshape(bt, T, D)
        tok = jnp.broadcast_to(tok_ref[...][None], (bt, NTOK, D))
        xseq = jnp.concatenate([tok, x], axis=1) + pe_ref[...][None]
        h_ref[...] = xseq.reshape(rows, D).astype(bf16)

    # ---- self-attention (post-norm), all heads in one batched contraction
    h = h_ref[...]                                        # (rows, D) bf16

    def proj(i):
        return (jnp.dot(h, qkv_w_ref[i], preferred_element_type=jnp.float32)
                + qkv_b_ref[i])

    q = proj(0) * scale
    k = proj(1)
    v = proj(2)

    def split_heads(t):                                   # (rows, D) -> (bt*H, S, dh)
        t = t.reshape(bt, S, H, dh)
        return jnp.transpose(t, (0, 2, 1, 3)).reshape(bt * H, S, dh)

    qh = split_heads(q).astype(bf16)
    kh = split_heads(k).astype(bf16)
    vh = split_heads(v).astype(bf16)

    sc = jnp.einsum('bqd,bkd->bqk', qh, kh, preferred_element_type=jnp.float32)
    if use_mask:  # only compiled when real padding exists (lengths is not None)
        bi = pl.program_id(0)
        m = mask_ref[pl.ds(bi * bt, bt), :]               # (bt, S), 1.0 = valid
        bias = jnp.broadcast_to(((1.0 - m) * (-1e9))[:, None, None, :],
                                (bt, H, S, S)).reshape(bt * H, S, S)
        sc = sc + bias
    sc = sc - jnp.max(sc, axis=-1, keepdims=True)
    p = jnp.exp(sc)
    p = p * pl.reciprocal(jnp.sum(p, axis=-1, keepdims=True), approx=True)

    av = jnp.einsum('bqk,bkd->bqd', p.astype(bf16), vh,
                    preferred_element_type=jnp.float32)   # (bt*H, S, dh)
    av = jnp.transpose(av.reshape(bt, H, S, dh), (0, 2, 1, 3)).reshape(rows, D)

    attn = (jnp.dot(av.astype(bf16), out_w_ref[...],
                    preferred_element_type=jnp.float32) + out_b_ref[...])
    h1 = _layer_norm(h.astype(jnp.float32) + attn, ln1_w_ref[...], ln1_b_ref[...])

    # ---- feed-forward (GELU)
    f = (jnp.dot(h1.astype(bf16), ffn_w1_ref[...],
                 preferred_element_type=jnp.float32) + ffn_b1_ref[...])
    f = _gelu(f)
    f = (jnp.dot(f.astype(bf16), ffn_w2_ref[...],
                 preferred_element_type=jnp.float32) + ffn_b2_ref[...])
    h2 = _layer_norm(h1 + f, ln2_w_ref[...], ln2_b_ref[...])

    h_ref[...] = h2.astype(bf16)

    # ---- last layer: token 0 -> encoder LayerNorm -> classifier
    @pl.when(layer == n_layers - 1)
    def _():
        feat = h2.reshape(bt, S, D)[:, 0, :]              # (bt, D)
        feat = _layer_norm(feat, enc_ln_w_ref[...], enc_ln_b_ref[...])
        logits = (jnp.dot(feat.astype(bf16), cls_w_ref[...],
                          preferred_element_type=jnp.float32) + cls_b_ref[...])
        out_ref[...] = logits.reshape(bt, 1, logits.shape[-1])


# ----------------------------------------------------------------------------
# Wrapper: parameter plumbing, padding, BlockSpecs / grid.
# ----------------------------------------------------------------------------
def style_classification_forward(features, params, *, num_heads,
                                 lengths=None, b_tile=None):
    B, T, F = features.shape
    assert F == F_IN
    D = params['skel_w'].shape[1]
    C = params['cls_w'].shape[1]
    FF = params['ffn_w1'].shape[2]
    L = params['qkv_w'].shape[0]
    S = T + NTOK

    if b_tile is None:  # ~2 batch tiles -> one per TensorCore on v7x
        b_tile = B // 2 if (B >= 2 and B % 2 == 0) else B
    assert B % b_tile == 0
    nb = B // b_tile

    bf16 = jnp.bfloat16
    # pad the 263 contraction dim to 384 lanes (zeros contribute nothing)
    feats = jnp.pad(features.astype(jnp.float32),
                    ((0, 0), (0, 0), (0, K_PAD - F))).astype(bf16)
    skel_w = jnp.pad(params['skel_w'], ((0, K_PAD - F), (0, 0))).astype(bf16)

    use_mask = lengths is not None
    if use_mask:
        lengths = jnp.asarray(lengths, jnp.int32)
        tmask = (jnp.arange(T)[None, :] < lengths[:, None]).astype(jnp.float32)
        mask = jnp.concatenate([jnp.ones((B, NTOK), jnp.float32), tmask], axis=1)
    else:
        mask = jnp.ones((B, S), jnp.float32)  # all-valid (lengths=None path)

    lmap = lambda b, l: (l, 0, 0)
    lmap4 = lambda b, l: (l, 0, 0, 0)
    cmap = lambda b, l: (0, 0)

    in_specs = [
        pl.BlockSpec((b_tile, T, K_PAD), lambda b, l: (b, 0, 0)),   # features
        pl.BlockSpec((B, S), cmap),                                 # mask
        pl.BlockSpec((K_PAD, D), cmap),                             # skel_w
        pl.BlockSpec((1, D), cmap),                                 # skel_b
        pl.BlockSpec((NTOK, D), cmap),                              # token
        pl.BlockSpec((S, D), cmap),                                 # pe
        pl.BlockSpec((None, 3, D, D), lmap4),                       # qkv_w
        pl.BlockSpec((None, 3, 1, D), lmap4),                       # qkv_b
        pl.BlockSpec((None, D, D), lmap),                           # out_w
        pl.BlockSpec((None, 1, D), lmap),                           # out_b
        pl.BlockSpec((None, 1, D), lmap),                           # ln1_w
        pl.BlockSpec((None, 1, D), lmap),                           # ln1_b
        pl.BlockSpec((None, D, FF), lmap),                          # ffn_w1
        pl.BlockSpec((None, 1, FF), lmap),                          # ffn_b1
        pl.BlockSpec((None, FF, D), lmap),                          # ffn_w2
        pl.BlockSpec((None, 1, D), lmap),                           # ffn_b2
        pl.BlockSpec((None, 1, D), lmap),                           # ln2_w
        pl.BlockSpec((None, 1, D), lmap),                           # ln2_b
        pl.BlockSpec((1, D), cmap),                                 # enc_ln_w
        pl.BlockSpec((1, D), cmap),                                 # enc_ln_b
        pl.BlockSpec((D, C), cmap),                                 # cls_w
        pl.BlockSpec((1, C), cmap),                                 # cls_b
    ]
    out_spec = pl.BlockSpec((b_tile, 1, C), lambda b, l: (b, 0, 0))

    out = pl.pallas_call(
        partial(style_cls_kernel, num_heads=num_heads, use_mask=use_mask),
        out_shape=jax.ShapeDtypeStruct((B, 1, C), jnp.float32),
        grid_spec=pltpu.PrefetchScalarGridSpec(
            num_scalar_prefetch=0,
            grid=(nb, L),
            in_specs=in_specs,
            out_specs=out_spec,
            scratch_shapes=[pltpu.VMEM((b_tile * S, D), jnp.bfloat16)],
        ),
        compiler_params=pltpu.CompilerParams(
            dimension_semantics=("parallel", "arbitrary"),
            vmem_limit_bytes=48 * 1024 * 1024,
        ),
    )(feats, mask, skel_w, params['skel_b'], params['token'], params['pe'][:S],
      params['qkv_w'].astype(bf16), params['qkv_b'],
      params['out_w'].astype(bf16), params['out_b'],
      params['ln1_w'], params['ln1_b'],
      params['ffn_w1'].astype(bf16), params['ffn_b1'],
      params['ffn_w2'].astype(bf16), params['ffn_b2'],
      params['ln2_w'], params['ln2_b'],
      params['enc_ln_w'], params['enc_ln_b'],
      params['cls_w'].astype(bf16), params['cls_b'])
    return out.reshape(B, C)


# ----------------------------------------------------------------------------
# Pure-JAX reference (f32 math, weights rounded to bf16 to match kernel inputs)
# ----------------------------------------------------------------------------
def reference_forward(features, params, *, num_heads):
    bf = lambda a: a.astype(jnp.bfloat16).astype(jnp.float32)
    B, T, _ = features.shape
    D = params['skel_w'].shape[1]
    H = num_heads
    dh = D // H
    L = params['qkv_w'].shape[0]

    def ln(x, w, b, eps=1e-5):
        mu = x.mean(-1, keepdims=True)
        var = ((x - mu) ** 2).mean(-1, keepdims=True)
        return (x - mu) / jnp.sqrt(var + eps) * w + b

    x = bf(features) @ bf(params['skel_w']) + params['skel_b']      # (B, T, D)
    tok = jnp.broadcast_to(params['token'][None], (B, NTOK, D))
    h = jnp.concatenate([tok, x], axis=1) + params['pe'][:T + NTOK][None]

    for l in range(L):
        qkv_w = bf(params['qkv_w'][l]); qkv_b = params['qkv_b'][l]
        q = h @ qkv_w[0] + qkv_b[0]
        k = h @ qkv_w[1] + qkv_b[1]
        v = h @ qkv_w[2] + qkv_b[2]
        q = q.reshape(B, -1, H, dh).transpose(0, 2, 1, 3) / math.sqrt(dh)
        k = k.reshape(B, -1, H, dh).transpose(0, 2, 1, 3)
        v = v.reshape(B, -1, H, dh).transpose(0, 2, 1, 3)
        sc = jnp.einsum('bhqd,bhkd->bhqk', q, k)
        p = jax.nn.softmax(sc, axis=-1)
        av = jnp.einsum('bhqk,bhkd->bhqd', p, v).transpose(0, 2, 1, 3).reshape(B, -1, D)
        attn = av @ bf(params['out_w'][l]) + params['out_b'][l]
        h = ln(h + attn, params['ln1_w'][l], params['ln1_b'][l])
        f = h @ bf(params['ffn_w1'][l]) + params['ffn_b1'][l]
        f = 0.5 * f * (1.0 + lax.erf(f / math.sqrt(2.0)))
        f = f @ bf(params['ffn_w2'][l]) + params['ffn_b2'][l]
        h = ln(h + f, params['ln2_w'][l], params['ln2_b'][l])

    feat = ln(h[:, 0, :], params['enc_ln_w'], params['enc_ln_b'])
    return feat @ bf(params['cls_w']) + params['cls_b']


def init_params(key, *, nclasses, latent_dim, ff_size, num_layers, max_seq):
    D, FF, L, C = latent_dim, ff_size, num_layers, nclasses
    ks = jax.random.split(key, 14)

    def rnd(k, shape, scale=0.05):
        return (scale * jax.random.normal(k, shape)).astype(jnp.float32)

    # NOTE: linear weights stored transposed, i.e. (in_features, out_features)
    return dict(
        skel_w=rnd(ks[0], (F_IN, D)),
        skel_b=rnd(ks[1], (1, D)),
        token=rnd(ks[2], (NTOK, D), scale=1.0),       # torch.randn(2, D)
        pe=rnd(ks[3], (max_seq, D)),                  # learned positional emb
        qkv_w=rnd(ks[4], (L, 3, D, D)),
        qkv_b=rnd(ks[5], (L, 3, 1, D)),
        out_w=rnd(ks[6], (L, D, D)),
        out_b=rnd(ks[7], (L, 1, D)),
        ln1_w=jnp.ones((L, 1, D), jnp.float32),
        ln1_b=jnp.zeros((L, 1, D), jnp.float32),
        ffn_w1=rnd(ks[8], (L, D, FF)),
        ffn_b1=rnd(ks[9], (L, 1, FF)),
        ffn_w2=rnd(ks[10], (L, FF, D)),
        ffn_b2=rnd(ks[11], (L, 1, D)),
        ln2_w=jnp.ones((L, 1, D), jnp.float32),
        ln2_b=jnp.zeros((L, 1, D), jnp.float32),
        enc_ln_w=jnp.ones((1, D), jnp.float32),
        enc_ln_b=jnp.zeros((1, D), jnp.float32),
        cls_w=rnd(ks[12], (D, C)),
        cls_b=rnd(ks[13], (1, C)),
    )


if __name__ == "__main__":
    # Small config consistent with the module:
    #   nclasses=10, latent_dim=[1, 64], ff_size=128, num_layers=2, num_heads=4
    B, T = 2, 8
    D, FF, L, H, C = 64, 128, 2, 4, 10

    key = jax.random.PRNGKey(0)
    k_feat, k_param = jax.random.split(key)
    features = jax.random.normal(k_feat, (B, T, F_IN), dtype=jnp.float32)
    params = init_params(k_param, nclasses=C, latent_dim=D, ff_size=FF,
                         num_layers=L, max_seq=T + NTOK)

    logits = style_classification_forward(features, params, num_heads=H, b_tile=1)
    logits = jax.block_until_ready(logits)
    assert logits.shape == (B, C)
    assert bool(jnp.all(jnp.isfinite(logits)))

    ref = reference_forward(features, params, num_heads=H)
    err = float(jnp.max(jnp.abs(logits - ref)))
    assert err < 1e-1, f"max|diff|={err}"
    print("KERNEL_OK")
</pallas_src>

<mosaic_0001>
module attributes {stable_mosaic.version = 11 : i64} {
  func.func @style_cls_kernel(%arg0: i32, %arg1: i32, %arg2: memref<1x8x384xbf16, #tpu.memory_space<vmem>>, %arg3: memref<2x10xf32, #tpu.memory_space<vmem>>, %arg4: memref<384x64xbf16, #tpu.memory_space<vmem>>, %arg5: memref<1x64xf32, #tpu.memory_space<vmem>>, %arg6: memref<2x64xf32, #tpu.memory_space<vmem>>, %arg7: memref<10x64xf32, #tpu.memory_space<vmem>>, %arg8: memref<1x3x64x64xbf16, #tpu.memory_space<vmem>>, %arg9: memref<1x3x1x64xf32, #tpu.memory_space<vmem>>, %arg10: memref<1x64x64xbf16, #tpu.memory_space<vmem>>, %arg11: memref<1x1x64xf32, #tpu.memory_space<vmem>>, %arg12: memref<1x1x64xf32, #tpu.memory_space<vmem>>, %arg13: memref<1x1x64xf32, #tpu.memory_space<vmem>>, %arg14: memref<1x64x128xbf16, #tpu.memory_space<vmem>>, %arg15: memref<1x1x128xf32, #tpu.memory_space<vmem>>, %arg16: memref<1x128x64xbf16, #tpu.memory_space<vmem>>, %arg17: memref<1x1x64xf32, #tpu.memory_space<vmem>>, %arg18: memref<1x1x64xf32, #tpu.memory_space<vmem>>, %arg19: memref<1x1x64xf32, #tpu.memory_space<vmem>>, %arg20: memref<1x64xf32, #tpu.memory_space<vmem>>, %arg21: memref<1x64xf32, #tpu.memory_space<vmem>>, %arg22: memref<64x10xbf16, #tpu.memory_space<vmem>>, %arg23: memref<1x10xf32, #tpu.memory_space<vmem>>, %arg24: memref<1x1x10xf32, #tpu.memory_space<vmem>>, %arg25: memref<10x64xbf16, #tpu.memory_space<vmem>>) attributes {dimension_semantics = [#tpu.dimension_semantics<parallel>, #tpu.dimension_semantics<arbitrary>], iteration_bounds = array<i64: 2, 2>, scalar_prefetch = 0 : i64, scratch_operands = 1 : i64, tpu.core_type = #tpu.core_type<tc>, window_params = [{transform_indices = @transform_0, window_bounds = array<i64: 1, 8, 384>}, {pipeline_mode = #tpu.pipeline_mode<synchronous>, transform_indices = @transform_1, window_bounds = array<i64: 2, 10>}, {pipeline_mode = #tpu.pipeline_mode<synchronous>, transform_indices = @transform_2, window_bounds = array<i64: 384, 64>}, {pipeline_mode = #tpu.pipeline_mode<synchronous>, transform_indices = @transform_3, window_bounds = array<i64: 1, 64>}, {pipeline_mode = #tpu.pipeline_mode<synchronous>, transform_indices = @transform_4, window_bounds = array<i64: 2, 64>}, {pipeline_mode = #tpu.pipeline_mode<synchronous>, transform_indices = @transform_5, window_bounds = array<i64: 10, 64>}, {transform_indices = @transform_6, window_bounds = array<i64: 1, 3, 64, 64>}, {transform_indices = @transform_7, window_bounds = array<i64: 1, 3, 1, 64>}, {transform_indices = @transform_8, window_bounds = array<i64: 1, 64, 64>}, {transform_indices = @transform_9, window_bounds = array<i64: 1, 1, 64>}, {transform_indices = @transform_10, window_bounds = array<i64: 1, 1, 64>}, {transform_indices = @transform_11, window_bounds = array<i64: 1, 1, 64>}, {transform_indices = @transform_12, window_bounds = array<i64: 1, 64, 128>}, {transform_indices = @transform_13, window_bounds = array<i64: 1, 1, 128>}, {transform_indices = @transform_14, window_bounds = array<i64: 1, 128, 64>}, {transform_indices = @transform_15, window_bounds = array<i64: 1, 1, 64>}, {transform_indices = @transform_16, window_bounds = array<i64: 1, 1, 64>}, {transform_indices = @transform_17, window_bounds = array<i64: 1, 1, 64>}, {pipeline_mode = #tpu.pipeline_mode<synchronous>, transform_indices = @transform_18, window_bounds = array<i64: 1, 64>}, {pipeline_mode = #tpu.pipeline_mode<synchronous>, transform_indices = @transform_19, window_bounds = array<i64: 1, 64>}, {pipeline_mode = #tpu.pipeline_mode<synchronous>, transform_indices = @transform_20, window_bounds = array<i64: 64, 10>}, {pipeline_mode = #tpu.pipeline_mode<synchronous>, transform_indices = @transform_21, window_bounds = array<i64: 1, 10>}, {transform_indices = @transform_22, window_bounds = array<i64: 1, 1, 10>}]} {
    %c0_i32 = arith.constant 0 : i32
    %0 = arith.cmpi eq, %arg1, %c0_i32 : i32
    %1 = arith.extui %0 : i1 to i32
    %c0_i32_0 = arith.constant 0 : i32
    %2 = arith.cmpi ne, %1, %c0_i32_0 : i32
    scf.if %2 {
      %c0_80 = arith.constant 0 : index
      %c0_81 = arith.constant 0 : index
      %c0_82 = arith.constant 0 : index
      %147 = vector.load %arg2[%c0_80, %c0_81, %c0_82] : memref<1x8x384xbf16, #tpu.memory_space<vmem>>, vector<1x8x384xbf16>
      %148 = vector.shape_cast %147 : vector<1x8x384xbf16> to vector<8x384xbf16>
      %c0_83 = arith.constant 0 : index
      %c0_84 = arith.constant 0 : index
      %149 = vector.load %arg4[%c0_83, %c0_84] : memref<384x64xbf16, #tpu.memory_space<vmem>>, vector<384x64xbf16>
      %cst_85 = arith.constant dense<0.000000e+00> : vector<8x64xf32>
      %150 = tpu.matmul %148, %149, %cst_85 {dimension_numbers = #tpu.dot_dimension_numbers<[1], [0], [0], [1], [0, 0, 1, 1], [], []>} : vector<8x384xbf16>, vector<384x64xbf16>, vector<8x64xf32> -> vector<8x64xf32>
      %c0_86 = arith.constant 0 : index
      %c0_87 = arith.constant 0 : index
      %151 = vector.load %arg5[%c0_86, %c0_87] : memref<1x64xf32, #tpu.memory_space<vmem>>, vector<1x64xf32>
      %152 = vector.broadcast %151 : vector<1x64xf32> to vector<8x64xf32>
      %153 = arith.addf %150, %152 : vector<8x64xf32>
      %154 = vector.shape_cast %153 : vector<8x64xf32> to vector<1x8x64xf32>
      %c0_88 = arith.constant 0 : index
      %c0_89 = arith.constant 0 : index
      %155 = vector.load %arg6[%c0_88, %c0_89] : memref<2x64xf32, #tpu.memory_space<vmem>>, vector<2x64xf32>
      %156 = vector.shape_cast %155 : vector<2x64xf32> to vector<1x2x64xf32>
      %157 = tpu.concatenate %156, %154 in 1 : vector<1x2x64xf32>, vector<1x8x64xf32> -> vector<1x10x64xf32>
      %c0_90 = arith.constant 0 : index
      %c0_91 = arith.constant 0 : index
      %158 = vector.load %arg7[%c0_90, %c0_91] : memref<10x64xf32, #tpu.memory_space<vmem>>, vector<10x64xf32>
      %159 = vector.shape_cast %158 : vector<10x64xf32> to vector<1x10x64xf32>
      %160 = arith.addf %157, %159 : vector<1x10x64xf32>
      %161 = vector.shape_cast %160 : vector<1x10x64xf32> to vector<10x64xf32>
      %162 = arith.truncf %161 : vector<10x64xf32> to vector<10x64xbf16>
      %c0_92 = arith.constant 0 : index
      %c0_93 = arith.constant 0 : index
      %163 = vector.load %arg25[%c0_92, %c0_93] : memref<10x64xbf16, #tpu.memory_space<vmem>>, vector<10x64xbf16>
      tpu.vector_store %arg25[%c0_92, %c0_93], %162 {strides = array<i32>} : memref<10x64xbf16, #tpu.memory_space<vmem>>, vector<10x64xbf16>,
    } else {
    }
    %c0 = arith.constant 0 : index
    %c0_1 = arith.constant 0 : index
    %3 = vector.load %arg25[%c0, %c0_1] : memref<10x64xbf16, #tpu.memory_space<vmem>>, vector<10x64xbf16>
    %c0_2 = arith.constant 0 : index
    %c0_3 = arith.constant 0 : index
    %c0_4 = arith.constant 0 : index
    %c0_5 = arith.constant 0 : index
    %4 = vector.load %arg8[%c0_2, %c0_3, %c0_4, %c0_5] : memref<1x3x64x64xbf16, #tpu.memory_space<vmem>>, vector<1x1x64x64xbf16>
    %5 = vector.shape_cast %4 : vector<1x1x64x64xbf16> to vector<64x64xbf16>
    %cst = arith.constant dense<0.000000e+00> : vector<10x64xf32>
    %6 = tpu.matmul %3, %5, %cst {dimension_numbers = #tpu.dot_dimension_numbers<[1], [0], [0], [1], [0, 0, 1, 1], [], []>} : vector<10x64xbf16>, vector<64x64xbf16>, vector<10x64xf32> -> vector<10x64xf32>
    %c0_6 = arith.constant 0 : index
    %c0_7 = arith.constant 0 : index
    %c0_8 = arith.constant 0 : index
    %c0_9 = arith.constant 0 : index
    %7 = vector.load %arg9[%c0_6, %c0_7, %c0_8, %c0_9] : memref<1x3x1x64xf32, #tpu.memory_space<vmem>>, vector<1x1x1x64xf32>
    %8 = vector.shape_cast %7 : vector<1x1x1x64xf32> to vector<1x64xf32>
    %9 = vector.broadcast %8 : vector<1x64xf32> to vector<10x64xf32>
    %10 = arith.addf %6, %9 : vector<10x64xf32>
    %cst_10 = arith.constant 2.500000e-01 : f32
    %11 = vector.broadcast %cst_10 : f32 to vector<10x64xf32>
    %12 = arith.mulf %10, %11 : vector<10x64xf32>
    %c0_11 = arith.constant 0 : index
    %c1 = arith.constant 1 : index
    %c0_12 = arith.constant 0 : index
    %c0_13 = arith.constant 0 : index
    %13 = vector.load %arg8[%c0_11, %c1, %c0_12, %c0_13] : memref<1x3x64x64xbf16, #tpu.memory_space<vmem>>, vector<1x1x64x64xbf16>
    %14 = vector.shape_cast %13 : vector<1x1x64x64xbf16> to vector<64x64xbf16>
    %cst_14 = arith.constant dense<0.000000e+00> : vector<10x64xf32>
    %15 = tpu.matmul %3, %14, %cst_14 {dimension_numbers = #tpu.dot_dimension_numbers<[1], [0], [0], [1], [0, 0, 1, 1], [], []>} : vector<10x64xbf16>, vector<64x64xbf16>, vector<10x64xf32> -> vector<10x64xf32>
    %c0_15 = arith.constant 0 : index
    %c1_16 = arith.constant 1 : index
    %c0_17 = arith.constant 0 : index
    %c0_18 = arith.constant 0 : index
    %16 = vector.load %arg9[%c0_15, %c1_16, %c0_17, %c0_18] : memref<1x3x1x64xf32, #tpu.memory_space<vmem>>, vector<1x1x1x64xf32>
    %17 = vector.shape_cast %16 : vector<1x1x1x64xf32> to vector<1x64xf32>
    %18 = vector.broadcast %17 : vector<1x64xf32> to vector<10x64xf32>
    %19 = arith.addf %15, %18 : vector<10x64xf32>
    %c0_19 = arith.constant 0 : index
    %c2 = arith.constant 2 : index
    %c0_20 = arith.constant 0 : index
    %c0_21 = arith.constant 0 : index
    %20 = vector.load %arg8[%c0_19, %c2, %c0_20, %c0_21] : memref<1x3x64x64xbf16, #tpu.memory_space<vmem>>, vector<1x1x64x64xbf16>
    %21 = vector.shape_cast %20 : vector<1x1x64x64xbf16> to vector<64x64xbf16>
    %cst_22 = arith.constant dense<0.000000e+00> : vector<10x64xf32>
    %22 = tpu.matmul %3, %21, %cst_22 {dimension_numbers = #tpu.dot_dimension_numbers<[1], [0], [0], [1], [0, 0, 1, 1], [], []>} : vector<10x64xbf16>, vector<64x64xbf16>, vector<10x64xf32> -> vector<10x64xf32>
    %c0_23 = arith.constant 0 : index
    %c2_24 = arith.constant 2 : index
    %c0_25 = arith.constant 0 : index
    %c0_26 = arith.constant 0 : index
    %23 = vector.load %arg9[%c0_23, %c2_24, %c0_25, %c0_26] : memref<1x3x1x64xf32, #tpu.memory_space<vmem>>, vector<1x1x1x64xf32>
    %24 = vector.shape_cast %23 : vector<1x1x1x64xf32> to vector<1x64xf32>
    %25 = vector.broadcast %24 : vector<1x64xf32> to vector<10x64xf32>
    %26 = arith.addf %22, %25 : vector<10x64xf32>
    %27 = vector.shape_cast %12 : vector<10x64xf32> to vector<1x10x4x16xf32>
    %28 = tpu.transpose %27, [0, 2, 1, 3] : vector<1x10x4x16xf32> -> vector<1x4x10x16xf32>
    %29 = vector.shape_cast %28 : vector<1x4x10x16xf32> to vector<4x10x16xf32>
    %30 = arith.truncf %29 : vector<4x10x16xf32> to vector<4x10x16xbf16>
    %31 = vector.shape_cast %19 : vector<10x64xf32> to vector<1x10x4x16xf32>
    %32 = tpu.transpose %31, [0, 2, 1, 3] : vector<1x10x4x16xf32> -> vector<1x4x10x16xf32>
    %33 = vector.shape_cast %32 : vector<1x4x10x16xf32> to vector<4x10x16xf32>
    %34 = arith.truncf %33 : vector<4x10x16xf32> to vector<4x10x16xbf16>
    %35 = vector.shape_cast %26 : vector<10x64xf32> to vector<1x10x4x16xf32>
    %36 = tpu.transpose %35, [0, 2, 1, 3] : vector<1x10x4x16xf32> -> vector<1x4x10x16xf32>
    %37 = vector.shape_cast %36 : vector<1x4x10x16xf32> to vector<4x10x16xf32>
    %38 = arith.truncf %37 : vector<4x10x16xf32> to vector<4x10x16xbf16>
    "tpu.trace_start"() <{level = 10 : i32, message = "bqd,bkd->bqk"}> : () -> ()
    %cst_27 = arith.constant dense<0.000000e+00> : vector<4x10x10xf32>
    %39 = tpu.matmul %30, %34, %cst_27 {dimension_numbers = #tpu.dot_dimension_numbers<[2], [2], [1], [1], [0, 0, 0, 1, 1, 1], [0], [0]>} : vector<4x10x16xbf16>, vector<4x10x16xbf16>, vector<4x10x10xf32> -> vector<4x10x10xf32>
    "tpu.trace_stop"() : () -> ()
    %cst_28 = arith.constant dense<0xFF800000> : vector<4x10xf32>
    %40 = vector.multi_reduction <maximumf>, %39, %cst_28 [2] : vector<4x10x10xf32> to vector<4x10xf32>
    %41 = vector.shape_cast %40 : vector<4x10xf32> to vector<4x10x1xf32>
    %42 = vector.broadcast %41 : vector<4x10x1xf32> to vector<4x10x10xf32>
    %43 = arith.subf %39, %42 : vector<4x10x10xf32>
    %44 = math.exp %43 : vector<4x10x10xf32>
    %cst_29 = arith.constant dense<0.000000e+00> : vector<4x10xf32>
    %45 = vector.multi_reduction <add>, %44, %cst_29 [2] : vector<4x10x10xf32> to vector<4x10xf32>
    %46 = vector.shape_cast %45 : vector<4x10xf32> to vector<4x10x1xf32>
    %47 = tpu.reciprocal %46 {approx = true} : vector<4x10x1xf32> -> vector<4x10x1xf32>
    %48 = vector.broadcast %47 : vector<4x10x1xf32> to vector<4x10x10xf32>
    %49 = arith.mulf %44, %48 : vector<4x10x10xf32>
    %50 = arith.truncf %49 : vector<4x10x10xf32> to vector<4x10x10xbf16>
    "tpu.trace_start"() <{level = 10 : i32, message = "bqk,bkd->bqd"}> : () -> ()
    %cst_30 = arith.constant dense<0.000000e+00> : vector<4x10x16xf32>
    %51 = tpu.matmul %50, %38, %cst_30 {dimension_numbers = #tpu.dot_dimension_numbers<[2], [1], [1], [2], [0, 0, 0, 1, 1, 2], [0], [0]>} : vector<4x10x10xbf16>, vector<4x10x16xbf16>, vector<4x10x16xf32> -> vector<4x10x16xf32>
    "tpu.trace_stop"() : () -> ()
    %52 = vector.shape_cast %51 : vector<4x10x16xf32> to vector<1x4x10x16xf32>
    %53 = tpu.transpose %52, [0, 2, 1, 3] : vector<1x4x10x16xf32> -> vector<1x10x4x16xf32>
    %54 = vector.shape_cast %53 : vector<1x10x4x16xf32> to vector<10x64xf32>
    %55 = arith.truncf %54 : vector<10x64xf32> to vector<10x64xbf16>
    %c0_31 = arith.constant 0 : index
    %c0_32 = arith.constant 0 : index
    %c0_33 = arith.constant 0 : index
    %56 = vector.load %arg10[%c0_31, %c0_32, %c0_33] : memref<1x64x64xbf16, #tpu.memory_space<vmem>>, vector<1x64x64xbf16>
    %57 = vector.shape_cast %56 : vector<1x64x64xbf16> to vector<64x64xbf16>
    %cst_34 = arith.constant dense<0.000000e+00> : vector<10x64xf32>
    %58 = tpu.matmul %55, %57, %cst_34 {dimension_numbers = #tpu.dot_dimension_numbers<[1], [0], [0], [1], [0, 0, 1, 1], [], []>} : vector<10x64xbf16>, vector<64x64xbf16>, vector<10x64xf32> -> vector<10x64xf32>
    %c0_35 = arith.constant 0 : index
    %c0_36 = arith.constant 0 : index
    %c0_37 = arith.constant 0 : index
    %59 = vector.load %arg11[%c0_35, %c0_36, %c0_37] : memref<1x1x64xf32, #tpu.memory_space<vmem>>, vector<1x1x64xf32>
    %60 = vector.shape_cast %59 : vector<1x1x64xf32> to vector<1x64xf32>
    %61 = vector.broadcast %60 : vector<1x64xf32> to vector<10x64xf32>
    %62 = arith.addf %58, %61 : vector<10x64xf32>
    %63 = arith.extf %3 : vector<10x64xbf16> to vector<10x64xf32>
    %64 = arith.addf %63, %62 : vector<10x64xf32>
    %c0_38 = arith.constant 0 : index
    %c0_39 = arith.constant 0 : index
    %c0_40 = arith.constant 0 : index
    %65 = vector.load %arg12[%c0_38, %c0_39, %c0_40] : memref<1x1x64xf32, #tpu.memory_space<vmem>>, vector<1x1x64xf32>
    %66 = vector.shape_cast %65 : vector<1x1x64xf32> to vector<1x64xf32>
    %c0_41 = arith.constant 0 : index
    %c0_42 = arith.constant 0 : index
    %c0_43 = arith.constant 0 : index
    %67 = vector.load %arg13[%c0_41, %c0_42, %c0_43] : memref<1x1x64xf32, #tpu.memory_space<vmem>>, vector<1x1x64xf32>
    %68 = vector.shape_cast %67 : vector<1x1x64xf32> to vector<1x64xf32>
    %cst_44 = arith.constant dense<0.000000e+00> : vector<10xf32>
    %69 = vector.multi_reduction <add>, %64, %cst_44 [1] : vector<10x64xf32> to vector<10xf32>
    %70 = vector.shape_cast %69 : vector<10xf32> to vector<10x1xf32>
    %cst_45 = arith.constant 6.400000e+01 : f32
    %71 = vector.broadcast %cst_45 : f32 to vector<10x1xf32>
    %72 = arith.divf %70, %71 : vector<10x1xf32>
    %73 = vector.broadcast %72 : vector<10x1xf32> to vector<10x64xf32>
    %74 = arith.subf %64, %73 : vector<10x64xf32>
    %75 = arith.mulf %74, %74 : vector<10x64xf32>
    %cst_46 = arith.constant dense<0.000000e+00> : vector<10xf32>
    %76 = vector.multi_reduction <add>, %75, %cst_46 [1] : vector<10x64xf32> to vector<10xf32>
    %77 = vector.shape_cast %76 : vector<10xf32> to vector<10x1xf32>
    %cst_47 = arith.constant 6.400000e+01 : f32
    %78 = vector.broadcast %cst_47 : f32 to vector<10x1xf32>
    %79 = arith.divf %77, %78 : vector<10x1xf32>
    %80 = vector.broadcast %72 : vector<10x1xf32> to vector<10x64xf32>
    %81 = arith.subf %64, %80 : vector<10x64xf32>
    %cst_48 = arith.constant 9.99999974E-6 : f32
    %82 = vector.broadcast %cst_48 : f32 to vector<10x1xf32>
    %83 = arith.addf %79, %82 : vector<10x1xf32>
    %84 = math.rsqrt %83 : vector<10x1xf32>
    %85 = vector.broadcast %84 : vector<10x1xf32> to vector<10x64xf32>
    %86 = arith.mulf %81, %85 : vector<10x64xf32>
    %87 = vector.broadcast %66 : vector<1x64xf32> to vector<10x64xf32>
    %88 = arith.mulf %86, %87 : vector<10x64xf32>
    %89 = vector.broadcast %68 : vector<1x64xf32> to vector<10x64xf32>
    %90 = arith.addf %88, %89 : vector<10x64xf32>
    %91 = arith.truncf %90 : vector<10x64xf32> to vector<10x64xbf16>
    %c0_49 = arith.constant 0 : index
    %c0_50 = arith.constant 0 : index
    %c0_51 = arith.constant 0 : index
    %92 = vector.load %arg14[%c0_49, %c0_50, %c0_51] : memref<1x64x128xbf16, #tpu.memory_space<vmem>>, vector<1x64x128xbf16>
    %93 = vector.shape_cast %92 : vector<1x64x128xbf16> to vector<64x128xbf16>
    %cst_52 = arith.constant dense<0.000000e+00> : vector<10x128xf32>
    %94 = tpu.matmul %91, %93, %cst_52 {dimension_numbers = #tpu.dot_dimension_numbers<[1], [0], [0], [1], [0, 0, 1, 1], [], []>} : vector<10x64xbf16>, vector<64x128xbf16>, vector<10x128xf32> -> vector<10x128xf32>
    %c0_53 = arith.constant 0 : index
    %c0_54 = arith.constant 0 : index
    %c0_55 = arith.constant 0 : index
    %95 = vector.load %arg15[%c0_53, %c0_54, %c0_55] : memref<1x1x128xf32, #tpu.memory_space<vmem>>, vector<1x1x128xf32>
    %96 = vector.shape_cast %95 : vector<1x1x128xf32> to vector<1x128xf32>
    %97 = vector.broadcast %96 : vector<1x128xf32> to vector<10x128xf32>
    %98 = arith.addf %94, %97 : vector<10x128xf32>
    %cst_56 = arith.constant 5.000000e-01 : f32
    %99 = vector.broadcast %cst_56 : f32 to vector<10x128xf32>
    %100 = arith.mulf %99, %98 : vector<10x128xf32>
    %cst_57 = arith.constant 0.707106769 : f32
    %101 = vector.broadcast %cst_57 : f32 to vector<10x128xf32>
    %102 = arith.mulf %98, %101 : vector<10x128xf32>
    %103 = math.erf %102 : vector<10x128xf32>
    %cst_58 = arith.constant 1.000000e+00 : f32
    %104 = vector.broadcast %cst_58 : f32 to vector<10x128xf32>
    %105 = arith.addf %104, %103 : vector<10x128xf32>
    %106 = arith.mulf %100, %105 : vector<10x128xf32>
    %107 = arith.truncf %106 : vector<10x128xf32> to vector<10x128xbf16>
    %c0_59 = arith.constant 0 : index
    %c0_60 = arith.constant 0 : index
    %c0_61 = arith.constant 0 : index
    %108 = vector.load %arg16[%c0_59, %c0_60, %c0_61] : memref<1x128x64xbf16, #tpu.memory_space<vmem>>, vector<1x128x64xbf16>
    %109 = vector.shape_cast %108 : vector<1x128x64xbf16> to vector<128x64xbf16>
    %cst_62 = arith.constant dense<0.000000e+00> : vector<10x64xf32>
    %110 = tpu.matmul %107, %109, %cst_62 {dimension_numbers = #tpu.dot_dimension_numbers<[1], [0], [0], [1], [0, 0, 1, 1], [], []>} : vector<10x128xbf16>, vector<128x64xbf16>, vector<10x64xf32> -> vector<10x64xf32>
    %c0_63 = arith.constant 0 : index
    %c0_64 = arith.constant 0 : index
    %c0_65 = arith.constant 0 : index
    %111 = vector.load %arg17[%c0_63, %c0_64, %c0_65] : memref<1x1x64xf32, #tpu.memory_space<vmem>>, vector<1x1x64xf32>
    %112 = vector.shape_cast %111 : vector<1x1x64xf32> to vector<1x64xf32>
    %113 = vector.broadcast %112 : vector<1x64xf32> to vector<10x64xf32>
    %114 = arith.addf %110, %113 : vector<10x64xf32>
    %115 = arith.addf %90, %114 : vector<10x64xf32>
    %c0_66 = arith.constant 0 : index
    %c0_67 = arith.constant 0 : index
    %c0_68 = arith.constant 0 : index
    %116 = vector.load %arg18[%c0_66, %c0_67, %c0_68] : memref<1x1x64xf32, #tpu.memory_space<vmem>>, vector<1x1x64xf32>
    %117 = vector.shape_cast %116 : vector<1x1x64xf32> to vector<1x64xf32>
    %c0_69 = arith.constant 0 : index
    %c0_70 = arith.constant 0 : index
    %c0_71 = arith.constant 0 : index
    %118 = vector.load %arg19[%c0_69, %c0_70, %c0_71] : memref<1x1x64xf32, #tpu.memory_space<vmem>>, vector<1x1x64xf32>
    %119 = vector.shape_cast %118 : vector<1x1x64xf32> to vector<1x64xf32>
    %cst_72 = arith.constant dense<0.000000e+00> : vector<10xf32>
    %120 = vector.multi_reduction <add>, %115, %cst_72 [1] : vector<10x64xf32> to vector<10xf32>
    %121 = vector.shape_cast %120 : vector<10xf32> to vector<10x1xf32>
    %cst_73 = arith.constant 6.400000e+01 : f32
    %122 = vector.broadcast %cst_73 : f32 to vector<10x1xf32>
    %123 = arith.divf %121, %122 : vector<10x1xf32>
    %124 = vector.broadcast %123 : vector<10x1xf32> to vector<10x64xf32>
    %125 = arith.subf %115, %124 : vector<10x64xf32>
    %126 = arith.mulf %125, %125 : vector<10x64xf32>
    %cst_74 = arith.constant dense<0.000000e+00> : vector<10xf32>
    %127 = vector.multi_reduction <add>, %126, %cst_74 [1] : vector<10x64xf32> to vector<10xf32>
    %128 = vector.shape_cast %127 : vector<10xf32> to vector<10x1xf32>
    %cst_75 = arith.constant 6.400000e+01 : f32
    %129 = vector.broadcast %cst_75 : f32 to vector<10x1xf32>
    %130 = arith.divf %128, %129 : vector<10x1xf32>
    %131 = vector.broadcast %123 : vector<10x1xf32> to vector<10x64xf32>
    %132 = arith.subf %115, %131 : vector<10x64xf32>
    %cst_76 = arith.constant 9.99999974E-6 : f32
    %133 = vector.broadcast %cst_76 : f32 to vector<10x1xf32>
    %134 = arith.addf %130, %133 : vector<10x1xf32>
    %135 = math.rsqrt %134 : vector<10x1xf32>
    %136 = vector.broadcast %135 : vector<10x1xf32> to vector<10x64xf32>
    %137 = arith.mulf %132, %136 : vector<10x64xf32>
    %138 = vector.broadcast %117 : vector<1x64xf32> to vector<10x64xf32>
    %139 = arith.mulf %137, %138 : vector<10x64xf32>
    %140 = vector.broadcast %119 : vector<1x64xf32> to vector<10x64xf32>
    %141 = arith.addf %139, %140 : vector<10x64xf32>
    %142 = arith.truncf %141 : vector<10x64xf32> to vector<10x64xbf16>
    %c0_77 = arith.constant 0 : index
    %c0_78 = arith.constant 0 : index
    %143 = vector.load %arg25[%c0_77, %c0_78] : memref<10x64xbf16, #tpu.memory_space<vmem>>, vector<10x64xbf16>
    tpu.vector_store %arg25[%c0_77, %c0_78], %142 {strides = array<i32>} : memref<10x64xbf16, #tpu.memory_space<vmem>>, vector<10x64xbf16>,
    %c1_i32 = arith.constant 1 : i32
    %144 = arith.cmpi eq, %arg1, %c1_i32 : i32
    %145 = arith.extui %144 : i1 to i32
    %c0_i32_79 = arith.constant 0 : i32
    %146 = arith.cmpi ne, %145, %c0_i32_79 : i32
    scf.if %146 {
      %147 = vector.shape_cast %141 : vector<10x64xf32> to vector<1x10x64xf32>
      %148 = vector.extract_strided_slice %147 {offsets = [0, 0, 0], sizes = [1, 1, 64], strides = [1, 1, 1]} : vector<1x10x64xf32> to vector<1x1x64xf32>
      %149 = vector.shape_cast %148 : vector<1x1x64xf32> to vector<1x64xf32>
      %c0_80 = arith.constant 0 : index
      %c0_81 = arith.constant 0 : index
      %150 = vector.load %arg20[%c0_80, %c0_81] : memref<1x64xf32, #tpu.memory_space<vmem>>, vector<1x64xf32>
      %c0_82 = arith.constant 0 : index
      %c0_83 = arith.constant 0 : index
      %151 = vector.load %arg21[%c0_82, %c0_83] : memref<1x64xf32, #tpu.memory_space<vmem>>, vector<1x64xf32>
      %cst_84 = arith.constant dense<0.000000e+00> : vector<1xf32>
      %152 = vector.multi_reduction <add>, %149, %cst_84 [1] : vector<1x64xf32> to vector<1xf32>
      %153 = vector.shape_cast %152 : vector<1xf32> to vector<1x1xf32>
      %cst_85 = arith.constant 6.400000e+01 : f32
      %154 = vector.broadcast %cst_85 : f32 to vector<1x1xf32>
      %155 = arith.divf %153, %154 : vector<1x1xf32>
      %156 = vector.broadcast %155 : vector<1x1xf32> to vector<1x64xf32>
      %157 = arith.subf %149, %156 : vector<1x64xf32>
      %158 = arith.mulf %157, %157 : vector<1x64xf32>
      %cst_86 = arith.constant dense<0.000000e+00> : vector<1xf32>
      %159 = vector.multi_reduction <add>, %158, %cst_86 [1] : vector<1x64xf32> to vector<1xf32>
      %160 = vector.shape_cast %159 : vector<1xf32> to vector<1x1xf32>
      %cst_87 = arith.constant 6.400000e+01 : f32
      %161 = vector.broadcast %cst_87 : f32 to vector<1x1xf32>
      %162 = arith.divf %160, %161 : vector<1x1xf32>
      %163 = vector.broadcast %155 : vector<1x1xf32> to vector<1x64xf32>
      %164 = arith.subf %149, %163 : vector<1x64xf32>
      %cst_88 = arith.constant 9.99999974E-6 : f32
      %165 = vector.broadcast %cst_88 : f32 to vector<1x1xf32>
      %166 = arith.addf %162, %165 : vector<1x1xf32>
      %167 = math.rsqrt %166 : vector<1x1xf32>
      %168 = vector.broadcast %167 : vector<1x1xf32> to vector<1x64xf32>
      %169 = arith.mulf %164, %168 : vector<1x64xf32>
      %170 = arith.mulf %169, %150 : vector<1x64xf32>
      %171 = arith.addf %170, %151 : vector<1x64xf32>
      %172 = arith.truncf %171 : vector<1x64xf32> to vector<1x64xbf16>
      %c0_89 = arith.constant 0 : index
      %c0_90 = arith.constant 0 : index
      %173 = vector.load %arg22[%c0_89, %c0_90] : memref<64x10xbf16, #tpu.memory_space<vmem>>, vector<64x10xbf16>
      %cst_91 = arith.constant dense<0.000000e+00> : vector<1x10xf32>
      %174 = tpu.matmul %172, %173, %cst_91 {dimension_numbers = #tpu.dot_dimension_numbers<[1], [0], [0], [1], [0, 0, 1, 1], [], []>} : vector<1x64xbf16>, vector<64x10xbf16>, vector<1x10xf32> -> vector<1x10xf32>
      %c0_92 = arith.constant 0 : index
      %c0_93 = arith.constant 0 : index
      %175 = vector.load %arg23[%c0_92, %c0_93] : memref<1x10xf32, #tpu.memory_space<vmem>>, vector<1x10xf32>
      %176 = arith.addf %174, %175 : vector<1x10xf32>
      %177 = vector.shape_cast %176 : vector<1x10xf32> to vector<1x1x10xf32>
      %c0_94 = arith.constant 0 : index
      %c0_95 = arith.constant 0 : index
      %c0_96 = arith.constant 0 : index
      %178 = vector.load %arg24[%c0_94, %c0_95, %c0_96] : memref<1x1x10xf32, #tpu.memory_space<vmem>>, vector<1x1x10xf32>
      tpu.vector_store %arg24[%c0_94, %c0_95, %c0_96], %177 {strides = array<i32>} : memref<1x1x10xf32, #tpu.memory_space<vmem>>, vector<1x1x10xf32>,
    } else {
    }
    return
  }
  func.func @transform_0(%arg0: i32, %arg1: i32) -> (i32, i32, i32) {
    %c0_i32 = arith.constant 0 : i32
    %c0_i32_0 = arith.constant 0 : i32
    %c0_i32_1 = arith.constant 0 : i32
    return %arg0, %c0_i32, %c0_i32_0 : i32, i32, i32
  }
  func.func @transform_1(%arg0: i32, %arg1: i32) -> (i32, i32) {
    %c0_i32 = arith.constant 0 : i32
    %c0_i32_0 = arith.constant 0 : i32
    %c0_i32_1 = arith.constant 0 : i32
    return %c0_i32, %c0_i32_0 : i32, i32
  }
  func.func @transform_2(%arg0: i32, %arg1: i32) -> (i32, i32) {
    %c0_i32 = arith.constant 0 : i32
    %c0_i32_0 = arith.constant 0 : i32
    %c0_i32_1 = arith.constant 0 : i32
    return %c0_i32, %c0_i32_0 : i32, i32
  }
  func.func @transform_3(%arg0: i32, %arg1: i32) -> (i32, i32) {
    %c0_i32 = arith.constant 0 : i32
    %c0_i32_0 = arith.constant 0 : i32
    %c0_i32_1 = arith.constant 0 : i32
    return %c0_i32, %c0_i32_0 : i32, i32
  }
  func.func @transform_4(%arg0: i32, %arg1: i32) -> (i32, i32) {
    %c0_i32 = arith.constant 0 : i32
    %c0_i32_0 = arith.constant 0 : i32
    %c0_i32_1 = arith.constant 0 : i32
    return %c0_i32, %c0_i32_0 : i32, i32
  }
  func.func @transform_5(%arg0: i32, %arg1: i32) -> (i32, i32) {
    %c0_i32 = arith.constant 0 : i32
    %c0_i32_0 = arith.constant 0 : i32
    %c0_i32_1 = arith.constant 0 : i32
    return %c0_i32, %c0_i32_0 : i32, i32
  }
  func.func @transform_6(%arg0: i32, %arg1: i32) -> (i32, i32, i32, i32) {
    %c0_i32 = arith.constant 0 : i32
    %c0_i32_0 = arith.constant 0 : i32
    %c0_i32_1 = arith.constant 0 : i32
    %c0_i32_2 = arith.constant 0 : i32
    return %arg1, %c0_i32, %c0_i32_0, %c0_i32_1 : i32, i32, i32, i32
  }
  func.func @transform_7(%arg0: i32, %arg1: i32) -> (i32, i32, i32, i32) {
    %c0_i32 = arith.constant 0 : i32
    %c0_i32_0 = arith.constant 0 : i32
    %c0_i32_1 = arith.constant 0 : i32
    %c0_i32_2 = arith.constant 0 : i32
    return %arg1, %c0_i32, %c0_i32_0, %c0_i32_1 : i32, i32, i32, i32
  }
  func.func @transform_8(%arg0: i32, %arg1: i32) -> (i32, i32, i32) {
    %c0_i32 = arith.constant 0 : i32
    %c0_i32_0 = arith.constant 0 : i32
    %c0_i32_1 = arith.constant 0 : i32
    return %arg1, %c0_i32, %c0_i32_0 : i32, i32, i32
  }
  func.func @transform_9(%arg0: i32, %arg1: i32) -> (i32, i32, i32) {
    %c0_i32 = arith.constant 0 : i32
    %c0_i32_0 = arith.constant 0 : i32
    %c0_i32_1 = arith.constant 0 : i32
    return %arg1, %c0_i32, %c0_i32_0 : i32, i32, i32
  }
  func.func @transform_10(%arg0: i32, %arg1: i32) -> (i32, i32, i32) {
    %c0_i32 = arith.constant 0 : i32
    %c0_i32_0 = arith.constant 0 : i32
    %c0_i32_1 = arith.constant 0 : i32
    return %arg1, %c0_i32, %c0_i32_0 : i32, i32, i32
  }
  func.func @transform_11(%arg0: i32, %arg1: i32) -> (i32, i32, i32) {
    %c0_i32 = arith.constant 0 : i32
    %c0_i32_0 = arith.constant 0 : i32
    %c0_i32_1 = arith.constant 0 : i32
    return %arg1, %c0_i32, %c0_i32_0 : i32, i32, i32
  }
  func.func @transform_12(%arg0: i32, %arg1: i32) -> (i32, i32, i32) {
    %c0_i32 = arith.constant 0 : i32
    %c0_i32_0 = arith.constant 0 : i32
    %c0_i32_1 = arith.constant 0 : i32
    return %arg1, %c0_i32, %c0_i32_0 : i32, i32, i32
  }
  func.func @transform_13(%arg0: i32, %arg1: i32) -> (i32, i32, i32) {
    %c0_i32 = arith.constant 0 : i32
    %c0_i32_0 = arith.constant 0 : i32
    %c0_i32_1 = arith.constant 0 : i32
    return %arg1, %c0_i32, %c0_i32_0 : i32, i32, i32
  }
  func.func @transform_14(%arg0: i32, %arg1: i32) -> (i32, i32, i32) {
    %c0_i32 = arith.constant 0 : i32
    %c0_i32_0 = arith.constant 0 : i32
    %c0_i32_1 = arith.constant 0 : i32
    return %arg1, %c0_i32, %c0_i32_0 : i32, i32, i32
  }
  func.func @transform_15(%arg0: i32, %arg1: i32) -> (i32, i32, i32) {
    %c0_i32 = arith.constant 0 : i32
    %c0_i32_0 = arith.constant 0 : i32
    %c0_i32_1 = arith.constant 0 : i32
    return %arg1, %c0_i32, %c0_i32_0 : i32, i32, i32
  }
  func.func @transform_16(%arg0: i32, %arg1: i32) -> (i32, i32, i32) {
    %c0_i32 = arith.constant 0 : i32
    %c0_i32_0 = arith.constant 0 : i32
    %c0_i32_1 = arith.constant 0 : i32
    return %arg1, %c0_i32, %c0_i32_0 : i32, i32, i32
  }
  func.func @transform_17(%arg0: i32, %arg1: i32) -> (i32, i32, i32) {
    %c0_i32 = arith.constant 0 : i32
    %c0_i32_0 = arith.constant 0 : i32
    %c0_i32_1 = arith.constant 0 : i32
    return %arg1, %c0_i32, %c0_i32_0 : i32, i32, i32
  }
  func.func @transform_18(%arg0: i32, %arg1: i32) -> (i32, i32) {
    %c0_i32 = arith.constant 0 : i32
    %c0_i32_0 = arith.constant 0 : i32
    %c0_i32_1 = arith.constant 0 : i32
    return %c0_i32, %c0_i32_0 : i32, i32
  }
  func.func @transform_19(%arg0: i32, %arg1: i32) -> (i32, i32) {
    %c0_i32 = arith.constant 0 : i32
    %c0_i32_0 = arith.constant 0 : i32
    %c0_i32_1 = arith.constant 0 : i32
    return %c0_i32, %c0_i32_0 : i32, i32
  }
  func.func @transform_20(%arg0: i32, %arg1: i32) -> (i32, i32) {
    %c0_i32 = arith.constant 0 : i32
    %c0_i32_0 = arith.constant 0 : i32
    %c0_i32_1 = arith.constant 0 : i32
    return %c0_i32, %c0_i32_0 : i32, i32
  }
  func.func @transform_21(%arg0: i32, %arg1: i32) -> (i32, i32) {
    %c0_i32 = arith.constant 0 : i32
    %c0_i32_0 = arith.constant 0 : i32
    %c0_i32_1 = arith.constant 0 : i32
    return %c0_i32, %c0_i32_0 : i32, i32
  }
  func.func @transform_22(%arg0: i32, %arg1: i32) -> (i32, i32, i32) {
    %c0_i32 = arith.constant 0 : i32
    %c0_i32_0 = arith.constant 0 : i32
    %c0_i32_1 = arith.constant 0 : i32
    return %arg0, %c0_i32, %c0_i32_0 : i32, i32, i32
  }
}

</mosaic_0001>

<bundles_post_ra>
// kernel: tpu_custom_call.1
= control target key start
LH: loop header
LB: loop body
LE: loop exit
PB: predicated region body
PF: predicated region fallthrough
CT: control target
= control target key end

     0   :  { %s4612_s0 = inlined_call_operand.vmem [shape: bf16[2,8,384], index: 0, kind: input, shape index: {}]   ;;  %s4613_s1 = inlined_call_operand.vmem [shape: f32[2,10], index: 1, kind: input, shape index: {}]   ;;  %s4614_s2 = inlined_call_operand.vmem [shape: bf16[384,64], index: 2, kind: input, shape index: {}]   ;;  %s4615_s3 = inlined_call_operand.vmem [shape: f32[1,64], index: 3, kind: input, shape index: {}]   ;;  %s4616_s4 = inlined_call_operand.vmem [shape: f32[2,64], index: 4, kind: input, shape index: {}]   ;;  %s4617_s5 = inlined_call_operand.vmem [shape: f32[10,64], index: 5, kind: input, shape index: {}]   ;;  %s4618_s6 = inlined_call_operand.vmem [shape: bf16[2,3,64,64], index: 6, kind: input, shape index: {}]   ;;  %s4619_s7 = inlined_call_operand.vmem [shape: f32[2,3,1,64], index: 7, kind: input, shape index: {}]   ;;  %s4620_s8 = inlined_call_operand.vmem [shape: bf16[2,64,64], index: 8, kind: input, shape index: {}]   ;;  %s4621_s9 = inlined_call_operand.vmem [shape: f32[2,1,64], index: 9, kind: input, shape index: {}]   ;;  %s4622_s10 = inlined_call_operand.vmem [shape: f32[2,1,64], index: 10, kind: input, shape index: {}]   ;;  %s4623_s11 = inlined_call_operand.vmem [shape: f32[2,1,64], index: 11, kind: input, shape index: {}]   ;;  %s4624_s12 = inlined_call_operand.vmem [shape: bf16[2,64,128], index: 12, kind: input, shape index: {}]   ;;  %s4625_s13 = inlined_call_operand.vmem [shape: f32[2,1,128], index: 13, kind: input, shape index: {}]   ;;  %s4626_s14 = inlined_call_operand.vmem [shape: bf16[2,128,64], index: 14, kind: input, shape index: {}]   ;;  %s4627_s15 = inlined_call_operand.vmem [shape: f32[2,1,64], index: 15, kind: input, shape index: {}]   ;;  %s4628_s16 = inlined_call_operand.vmem [shape: f32[2,1,64], index: 16, kind: input, shape index: {}]   ;;  %s4629_s17 = inlined_call_operand.vmem [shape: f32[2,1,64], index: 17, kind: input, shape index: {}]   ;;  %s4630_s18 = inlined_call_operand.vmem [shape: f32[1,64], index: 18, kind: input, shape index: {}]   ;;  %s4631_s19 = inlined_call_operand.vmem [shape: f32[1,64], index: 19, kind: input, shape index: {}]   ;;  %s4632_s20 = inlined_call_operand.vmem [shape: bf16[64,10], index: 20, kind: input, shape index: {}]   ;;  %s4633_s21 = inlined_call_operand.vmem [shape: f32[1,10], index: 21, kind: input, shape index: {}]   ;;  %s4634_s22 = inlined_call_operand.hbm [shape: f32[2,1,10], index: 22, kind: output, shape index: {}]  }
   0x1   :  { %4652 = sst [smem:[#allocation19_spill]] %s4612_s0 }
   0x2   :  { %4653 = sst [smem:[#allocation20_spill]] %s4614_s2 }
   0x3   :  { %4654 = sst [smem:[#allocation21_spill]] %s4615_s3 }
   0x4   :  { %4655 = sst [smem:[#allocation22_spill]] %s4616_s4 }
   0x5   :  { %4656 = sst [smem:[#allocation23_spill]] %s4617_s5 }
   0x6   :  { %4657 = sst [smem:[#allocation24_spill]] %s4618_s6 }
   0x7   :  { %4658 = sst [smem:[#allocation25_spill]] %s4619_s7 }
   0x8   :  { %4659 = sst [smem:[#allocation26_spill]] %s4620_s8 }
   0x9   :  { %4660 = sst [smem:[#allocation27_spill]] %s4630_s18 }
   0xa   :  { %4661 = sst [smem:[#allocation28_spill]] %s4631_s19 }
   0xb   :  { %4662 = sst [smem:[#allocation29_spill]] %s4632_s20 }
   0xc   :  { %4663 = sst [smem:[#allocation30_spill]] %s4633_s21 }
   0xd   :  { %4664 = sst [smem:[#allocation31_spill]] %s4634_s22 }
   0xe   :  { %27 = vsyncpa [#allocation4], 0 }
   0xf   :  { %29 = vsyncpa [#allocation4 + $0x1], 0  ;;  %s3843_s3 = smov 0   ;;  %s3845_s28 = smov 0  }
  0x10   :  { %s3847_s29 = smov 0   ;;  %s3849_s30 = smov 0  }
  0x11   :  { %s3851_s4 = smov 0   ;;  %s3853_s0 = smov 0  }
  0x12   :  { %s3855_s23 = smov 0   ;;  %s3857_s1 = smov 0  }
  0x13 LB: > { %4665 = sst [smem:[#allocation6_spill]] %s3689_s3  ;;  %s3092_s5 = sadd.s32 4294967295, %s3717_s1   ;;  %s3717_s1 = sphi %s3857_s1, %s35_s1   ;;  %s3713_s23 = sphi %s3855_s23, %s4713_s23   ;;  %s3709_s0 = sphi %s3853_s0, %s4712_s0   ;;  %s3705_s4 = sphi %s3851_s4, %s4711_s4   ;;  %s3701_s30 = sphi %s3849_s30, %s4716_s30   ;;  %s3697_s29 = sphi %s3847_s29, %s4709_s29   ;;  %s3693_s28 = sphi %s3845_s28, %s4715_s28   ;;  %s3689_s3 = sphi %s3843_s3, %s4714_s3  }
  0x14   : > { %4666 = sst [smem:[#allocation7_spill]] %s3697_s29  ;;  %s3093_s24 = sadd.s32 4294967294, %s3717_s1  }
  0x15   : > { %4667 = sst [smem:[#allocation8_spill]] %s3701_s30  ;;  %s44_s6 = sadd.s32 1, %s3709_s0 }
  0x16   : > { %4668 = sst [smem:[#allocation9_spill]] %s3705_s4  ;;  %p45_p0 = scmp.ge.s32.totalorder %s44_s6, 2 }
  0x17   : > { %4669 = sst [smem:[#allocation10_spill]] %s3709_s0  ;;  %s47_s25 = sadd.s32 1, %s3713_s23 }
  0x18   : > { %4670 = sst [smem:[#allocation11_spill]] %s3713_s23  ;;  %p591_p1 = scmp.ne.s32.totalorder %s3697_s29, %s3693_s28 }
  0x19   : > { %4671 = sst [smem:[#allocation12_spill]] %s3717_s1  ;;  %p592_p2 = scmp.eq.s32.totalorder %s3092_s5, 3 }
  0x1a   : > { %s4718_s6 = smov (%p45_p0, %s44_s6), 0  ;;  %s4720_s25 = smov (!%p45_p0, %s47_s25), %s3713_s23 }
  0x1b   : > { %4672 = sst [smem:[#allocation13_spill]] %s4718_s6  ;;  %p3892_p3 = por %p592_p2, %p591_p1 }
  0x1c   : > { %p597_p4 = scmp.ne.s32.totalorder %s3693_s28, %s3689_s3  ;;  %p49_p5 = scmp.ge.s32.totalorder %s4720_s25, 2 }
  0x1d   : > { %s4673_s26 = scalar_select %p3892_p3, 1, 0 }
  0x1e   : > { %p598_p6 = scmp.eq.s32.totalorder %s3093_s24, 3  ;;  %p3096_p7 = scmp.ge.s32.totalorder %s3717_s1, 1 }
  0x1f   : > { %4674 = sst [smem:[#allocation14_spill]] %s4673_s26  ;;  %p732_p8 = scmp.lt.s32.totalorder %s3717_s1, 5 }
  0x20   : > { %s4722_s25 = smov (%p49_p5, %s4720_s25), 0  ;;  %p3902_p9 = por %p598_p6, %p597_p4 }
  0x21   : > { %4675 = sst [smem:[#allocation15_spill]] %s4722_s25  ;;  %p733_p10 = pnand %p3096_p7, %p732_p8 }
  0x22   : > { %s4676_s2 = scalar_select %p3902_p9, 1, 0 }
  0x23   : > { %s578_s27 = ssub.s32 %s3713_s23, %s4722_s25  ;;  %s581_s5 = sadd.s32 1, %s3697_s29 }
  0x24   : > { %4677 = sst [smem:[#allocation16_spill]] %s4676_s2  ;;  %p579_p11 = scmp.eq.s32.totalorder %s578_s27, 0 }
  0x25   : > { %736 = sbr.rel (%p733_p10) target bundleno = 2737 (0xab1), region = 108 }
  0x26   : > { %s3910_s6 = scalar_select %p579_p11, %s3697_s29, %s581_s5  }
  0x28   : > { %4678 = sst [smem:[#allocation17_spill]] %s3910_s6 }
  0x2a   : > { %p838_p12 = scmp.lt.s32.totalorder %s3705_s4, 1  ;;  %p843_p13 = scmp.lt.s32.totalorder %s3701_s30, 1 }
  0x2b   : > { %s4679_s6 = sld [smem:[#allocation19_spill]]  ;;  %s4684_s18 = sand.u32 1, %s3693_s28  }
  0x2c   : > { %s839_s0 = scalar_select %p838_p12, %s3705_s4, 1 }
  0x2d   : > { %s3917_s3 = scalar_select %p843_p13, %s3701_s30, 1 }
  0x2e   : > { %s3431_s27 = smul.u32 12, %s839_s0  ;;  %s4681_s22 = sld [smem:[#allocation24_spill]] }
  0x2f   : > { %s3432_s5 = smul.u32 96, %s3917_s3  ;;  %s3371_s25 = sshll.u32 %s3917_s3, 5 }
  0x30   : > { %s3433_s2 = smul.u32 3, %s3917_s3  ;;  %s4682_s8 = sld [smem:[#allocation26_spill]] }
  0x31   : > { %s3924_s29 = scalar_lea.vmem %s4679_s6, %s3431_s27  ;;  %s4683_s7 = sld [smem:[#allocation25_spill]] }
  0x32   : > { %4680 = sst [smem:[#allocation18_spill]] %s3924_s29  ;;  %s884_s19 = scalar_lea.vmem %s4628_s16, %s3917_s3 }
  0x33   : > { %s3983_s20 = scalar_lea.vmem [#allocation3], %s4684_s18 }
  0x34   : > { %s3930_s4 = scalar_lea.vmem %s4681_s22, %s3432_s5  ;;  %s887_s5 = scalar_lea.vmem %s4629_s17, %s3917_s3 }
  0x36   : > { %s3935_s0 = scalar_lea.vmem %s4682_s8, %s3371_s25  ;;  %s3957_s8 = scalar_lea.vmem %s4624_s12, %s3371_s25 }
  0x37   : > { %s3940_s30 = scalar_lea.vmem %s4683_s7, %s3433_s2  ;;  %s3373_s7 = sshll.u32 %s3917_s3, 6 }
  0x38   : > { %s3971_s1 = scalar_lea.vmem %s4626_s14, %s3373_s7  ;;  %s4685_s2 = sld [smem:[#allocation8_spill]] }
  0x3e   : > { %p3105_p0 = scmp.ne.s32.totalorder %s4685_s2, 0 }
  0x3f   : > { %s4686_s6 = sld [smem:[#allocation20_spill]] (!%p3105_p0) }
  0x40   : > { %892 = sbr.rel (%p3105_p0) target bundleno = 245 (0xf5), region = 112  ;;  %s4687_s7 = sld [smem:[#allocation18_spill]] (!%p3105_p0) }
  0x41   : > { %s4688_s2 = sld [smem:[#allocation21_spill]] (!%p3105_p0) }
  0x42   : > { %s4689_s23 = sld [smem:[#allocation22_spill]] (!%p3105_p0) }
  0x43   : > { %s4690_s27 = sld [smem:[#allocation23_spill]] (!%p3105_p0) }
  0x45   : > { %v3381_v0 = vld [vmem:[%s4686_s6 + $0x38] sm:$0xff]  ;;  %v3380_v3 = vld [vmem:[%s4686_s6 + $0x30] sm:$0xff]  ;;  %v3379_v6 = vld [vmem:[%s4686_s6 + $0x28] sm:$0xff]  ;;  %vm1145_vm0 = vcmask 1041408   ;;  %vm1155_vm1 = vcmask 516096   ;;  %vm1153_vm2 = vcmask 519168  }
  0x46   : > { %v3389_v1 = vld [vmem:[%s4686_s6 + $0x78] sm:$0xff]  ;;  %1102 = vmatpush.bf16.msra.mxu0 %v3381_v0  ;;  %v3388_v4 = vld [vmem:[%s4686_s6 + $0x70] sm:$0xff]  ;;  %v3387_v7 = vld [vmem:[%s4686_s6 + $0x68] sm:$0xff] }
  0x47   : > { %v3397_v2 = vld [vmem:[%s4686_s6 + $0xb8] sm:$0xff]  ;;  %1115 = vmatpush.bf16.msra.mxu1 %v3389_v1  ;;  %v3396_v5 = vld [vmem:[%s4686_s6 + $0xb0] sm:$0xff]  ;;  %v3395_v8 = vld [vmem:[%s4686_s6 + $0xa8] sm:$0xff] }
  0x48   : > { %1128 = vmatpush.bf16.msra.mxu2 %v3397_v2  ;;  %v3378_v9 = vld [vmem:[%s4686_s6 + $0x20] sm:$0xff]  ;;  %v3377_v12 = vld [vmem:[%s4686_s6 + $0x18] sm:$0xff]  ;;  %v3376_v15 = vld [vmem:[%s4686_s6 + $0x10] sm:$0xff] }
  0x49   : > { %v3386_v10 = vld [vmem:[%s4686_s6 + $0x60] sm:$0xff]  ;;  %v3385_v13 = vld [vmem:[%s4686_s6 + $0x58] sm:$0xff]  ;;  %v3384_v16 = vld [vmem:[%s4686_s6 + $0x50] sm:$0xff] }
  0x4a   : > { %1103 = vmatpush.bf16.msra.mxu0 %v3380_v3  ;;  %v3394_v11 = vld [vmem:[%s4686_s6 + $0xa0] sm:$0xff]  ;;  %v3393_v14 = vld [vmem:[%s4686_s6 + $0x98] sm:$0xff]  ;;  %v3392_v17 = vld [vmem:[%s4686_s6 + $0x90] sm:$0xff] }
  0x4b   : > { %1116 = vmatpush.bf16.msra.mxu1 %v3388_v4  ;;  %v3375_v18 = vld [vmem:[%s4686_s6 + $0x8] sm:$0xff]  ;;  %v893_v20 = vld [vmem:[%s4687_s7] sm:$0xff] }
  0x4c   : > { %1129 = vmatpush.bf16.msra.mxu2 %v3396_v5  ;;  %v3383_v19 = vld [vmem:[%s4686_s6 + $0x48] sm:$0xff]  ;;  %v949_v23 = vunpack.c.l.b16 %v893_v20  ;;  %v950_v24 = vunpack.c.h.b16 %v893_v20  ;;  %v3374_v25 = vld [vmem:[%s4686_s6] sm:$0xff] }
  0x4d   : > { %v3391_v21 = vld [vmem:[%s4686_s6 + $0x88] sm:$0xff]  ;;  %v3382_v26 = vld [vmem:[%s4686_s6 + $0x40] sm:$0xff] }
  0x4e   : > { %1104 = vmatpush.bf16.msra.mxu0 %v3379_v6  ;;  %v894_v22 = vld [vmem:[%s4687_s7 + $0x8] sm:$0xf]  ;;  %v3390_v28 = vld [vmem:[%s4686_s6 + $0x80] sm:$0xff]  ;;  %v952_v29 = vpack.c.b16 %v949_v23, %v949_v23  ;;  %v953_v30 = vpack.c.b16 %v950_v24, %v950_v24 }
  0x4f   : > { %1117 = vmatpush.bf16.msra.mxu1 %v3387_v7  ;;  %v951_v27 = vunpack.c.l.b16 %v894_v22  ;;  %v3514_v32 = vld [vmem:[%s4688_s2] ss:$0 sm:$0xff]  ;;  %v1148_v42 = vld [vmem:[%s4690_s27 + $0x8] sm:$0x3] }
  0x50   : > { %1130 = vmatpush.bf16.msra.mxu2 %v3395_v8  ;;  %v1141_v41 = vld [vmem:[%s4689_s23] sm:$0x3] }
  0x51   : > { %v954_v31 = vpack.c.b16 %v951_v27, %v951_v27  ;;  %v1147_v44 = vld [vmem:[%s4690_s27] sm:$0xff] }
  0x52   : > { %1105 = vmatpush.bf16.msra.mxu0 %v3378_v9 }
  0x53   : > { %1118 = vmatpush.bf16.msra.mxu1 %v3386_v10 }
  0x54   : > { %1131 = vmatpush.bf16.msra.mxu2 %v3394_v11 }
  0x56   : > { %1106 = vmatpush.bf16.msra.mxu0 %v3377_v12 }
  0x57   : > { %1119 = vmatpush.bf16.msra.mxu1 %v3385_v13 }
  0x58   : > { %1132 = vmatpush.bf16.msra.mxu2 %v3393_v14 }
  0x5a   : > { %1107 = vmatpush.bf16.msra.mxu0 %v3376_v15 }
  0x5b   : > { %1120 = vmatpush.bf16.msra.mxu1 %v3384_v16 }
  0x5c   : > { %1133 = vmatpush.bf16.msra.mxu2 %v3392_v17 }
  0x5e   : > { %1108 = vmatpush.bf16.msra.mxu0 %v3375_v18 }
  0x5f   : > { %1121 = vmatpush.bf16.msra.mxu1 %v3383_v19 }
  0x60   : > { %1134 = vmatpush.bf16.msra.mxu2 %v3391_v21 }
  0x62   : > { %1109 = vmatpush.bf16.msra.mxu0 %v3374_v25 }
  0x63   : > { %1122 = vmatpush.bf16.msra.mxu1 %v3382_v26 }
  0x64   : > { %1135 = vmatpush.bf16.msra.mxu2 %v3390_v28 }
  0x65   : > { %1110 = vmatmul.bf16.vlgmr.msra.gmra.mxu0 %v952_v29 }
  0x66   : > { %1123 = vmatmul.bf16.vlgmr.msra.gmra.mxu1 %v953_v30 }
  0x67   : > { %1136 = vmatmul.bf16.vlgmr.msra.gmra.mxu2 %v954_v31 }
  0xe2   : > { %v1111_v33 = vpop.f32.mrf.mxu0 }
  0xe3   : > { %v1124_v34 = vpop.f32.mrf.mxu1  ;;  %v1112_v35 = vadd.f32 %v3514_v32, %v1111_v33 }
  0xe5   : > { %v1125_v36 = vadd.f32 %v1124_v34, %v1112_v35 }
  0xea   : > { %v1137_v37 = vpop.f32.mrf.mxu2  ;;  %v1113_v39 = vpop.f32.mrf.mxu0 }
  0xeb   : > { %v1138_v38 = vadd.f32 %v1137_v37, %v1125_v36  ;;  %v1126_v40 = vpop.f32.mrf.mxu1 }
  0xed   : > { %v1143_v43 = vrot.slane %v1138_v38, 6 }
  0xef   : > { %v1146_v45 = vsel %vm1145_vm0, %v1141_v41, %v1143_v43  ;;  %v1150_v46 = vadd.f32 %v1148_v42, %v1143_v43 }
  0xf0   : > { %v1149_v47 = vadd.f32 %v1147_v44, %v1146_v45 }
  0xf1   : > { %v1152_v48 = vpack.c.bf16 %v1150_v46, %v1150_v46 }
  0xf2   : > { %v1151_v49 = vpack.c.bf16 %v1149_v47, %v1149_v47  ;;  %v1139_v50 = vpop.f32.mrf.mxu2 }
  0xf3   : > { %1156 = vst.msk [vmem:[#allocation2 + $0x4] sm:$0x1] %vm1155_vm1, %v1152_v48 }
  0xf4   : > { %1154 = vst.msk [vmem:[#allocation2] sm:$0xf] %vm1153_vm2, %v1151_v49 }
  0xf5 PF: > { %v3402_v51 = vld [vmem:[%s3930_s4 + $0x18] sm:$0xff]  ;;  %v3401_v52 = vld [vmem:[%s3930_s4 + $0x10] sm:$0xff]  ;;  %v3400_v53 = vld [vmem:[%s3930_s4 + $0x8] sm:$0xff]  ;;  %vm1200_vm3 = vcmask 523264   ;;  %s3719_s7 = smov 96   ;;  %s3720_s25 = smov 80  }
  0xf6   : > { %1208 = vmatpush.bf16.msra.mxu1 %v3402_v51  ;;  %v3399_v54 = vld [vmem:[%s3930_s4] sm:$0xff]  ;;  %v3406_v57 = vld [vmem:[%s3930_s4 + $0x38] sm:$0xff]  ;;  %v3405_v59 = vld [vmem:[%s3930_s4 + $0x30] sm:$0xff]  ;;  %s3721_s2 = smov 112   ;;  %v3722_v13 = vmov 1983009808   ;;  %s4691_s23 = scalar_lea.vmem %s4621_s9, %s3917_s3 }
  0xf7   : > { %v3404_v60 = vld [vmem:[%s3930_s4 + $0x28] sm:$0xff]  ;;  %v3403_v61 = vld [vmem:[%s3930_s4 + $0x20] sm:$0xff]  ;;  %v1350_v14 = vunpack.c.l.s4 %v3722_v13  ;;  %vm1345_vm4 = vcmask 1047556   ;;  %v3723_v33 = vmov 1934713408   ;;  %vm1881_vm5 = vcmask 130048   ;;  %s4692_s29 = scalar_lea.vmem %s4622_s10, %s3917_s3 }
  0xf8   : > { %v3565_v62 = vld [vmem:[%s3940_s30] ss:$0 sm:$0xff]  ;;  %v3566_v7 = vld [vmem:[%s3940_s30 + $0x1] ss:$0 sm:$0xff]  ;;  %v1374_v34 = vunpack.c.l.s4 %v3723_v33  ;;  %vm1992_vm6 = vcmask 80896   ;;  %vm1996_vm7 = vcmask 74752  }
  0xf9   : > { %v4107_v18 = vunpack.c.0.s8 %v1350_v14  ;;  %vm2103_vm8 = vcmask 1044480   ;;  %s3726_s21 = smov 16   ;;  %vm2391_vm9 = vcmask 261120   ;;  %vm2394_vm10 = vcmask 392192  }
  0xfa   : > { %1209 = vmatpush.bf16.msra.mxu1 %v3401_v52  ;;  %v3398_v56 = vld [vmem:[#allocation2] sm:$0x10]  ;;  %v4120_v46 = vunpack.c.0.s8 %v1374_v34  ;;  %vm2460_vm11 = vcmask 517120  }
  0xfb   : > { %v3204_v55 = vld [vmem:[#allocation2] sm:$0xf] }
  0xfc   : > { %v4077_v58 = vor.u32 %v3398_v56, %v3204_v55 }
  0xfe   : > { %1210 = vmatpush.bf16.msra.mxu1 %v3400_v53 }
 0x102   : > { %1211 = vmatpush.bf16.msra.mxu1 %v3399_v54 }
 0x105   : > { %3222 = vmatmul.msk.bf16.vlgmr.msra.gmra.mxu1 %vm1200_vm3, %v4077_v58 }
 0x106   : > { %1262 = vmatpush.bf16.msrb.mxu1 %v3406_v57 }
 0x10a   : > { %1263 = vmatpush.bf16.msrb.mxu1 %v3405_v59 }
 0x10e   : > { %1264 = vmatpush.bf16.msrb.mxu1 %v3404_v60 }
 0x112   : > { %1265 = vmatpush.bf16.msrb.mxu1 %v3403_v61 }
 0x115   : > { %3248 = vmatmul.msk.bf16.vlgmr.msrb.gmra.mxu1 %vm1200_vm3, %v4077_v58 }
 0x182   : > { %v1213_v63 = vpop.f32.mrf.mxu1 }
 0x183   : > { %v1214_v0 = vadd.f32 %v3565_v62, %v1213_v63 }
 0x185   : > { %v1218_v1 = vmul.f32 0.25, %v1214_v0 }
 0x187   : > { %1332 = vrot.lane.b32.xlu2 %v1218_v1, %s3719_s7  ;;  %v1347_v16 = vrot.slane %v1218_v1, 4 }
 0x18a   : > { %v1215_v2 = vpop.f32.mrf.mxu1 }
 0x18b   : > { %v1216_v3 = vadd.f32 %v3565_v62, %v1215_v2 }
 0x18d   : > { %v4088_v4 = vmul.f32 0.25, %v1216_v3 }
 0x18f   : > { %v3530_v5 = vpack.i.bf16 %v4088_v4, %v1218_v1 }
 0x191   : > { %3531 = vrot.lane.b32.xlu2 %v3530_v5, %s3720_s25 }
 0x192   : > { %v1267_v6 = vpop.f32.mrf.mxu1 }
 0x193   : > { %v4093_v9 = vadd.f32 %v3566_v7, %v1267_v6 }
 0x195   : > { %v1529_v42 = vrot.slane %v4093_v9, 4 }
 0x19a   : > { %v1269_v8 = vpop.f32.mrf.mxu1 }
 0x19b   : > { %v4095_v10 = vadd.f32 %v3566_v7, %v1269_v8 }
 0x19d   : > { %v3525_v11 = vpack.i.bf16 %v4095_v10, %v4093_v9 }
 0x19f   : > { %3526 = vrot.lane.b32.xlu1 %v3525_v11, %s3720_s25  ;;  %3516 = vrot.lane.b32.xlu0 %v3525_v11, %s3721_s2 }
 0x1a7   : > { %3521 = vrot.lane.b32.xlu0 %v3525_v11, %s3719_s7  ;;  %1326 = vrot.lane.b32.xlu1 %v1218_v1, %s3721_s2 }
 0x1af   : > { %1328 = vrot.lane.b32.xlu0 %v4088_v4, %s3721_s2  ;;  %1334 = vrot.lane.b32.xlu1 %v4088_v4, %s3719_s7 }
 0x1e1   : > { %v1333_v12 = vpop.permute.xlu2 %1332 }
 0x1e2   : > { %v1344_v15 = vrot.slane %v1333_v12, 4  ;;  %v1348_v20 = vsel %vm1345_vm4, %v1333_v12, %v1347_v16 }
 0x1e3   : > { %v1356_v32 = vperm.slane %v1348_v20, %v4107_v18 }
 0x1e4   : > { %v1346_v19 = vsel %vm1345_vm4, %v1344_v15, %v1218_v1 }
 0x1e5   : > { %v1352_v31 = vperm.slane %v1346_v19, %v4107_v18  ;;  %v1383_v44 = vrot.slane %v1356_v32, 4 }
 0x1e7   : > { %v1371_v43 = vrot.slane %v1352_v31, 4 }
 0x1eb   : > { %v3532_v17 = vpop.permute.xlu2 %3531 }
 0x1ec   : > { %v3533_v26 = vunpack.i.l.bf16 %v3532_v17  ;;  %v3534_v38 = vunpack.i.h.bf16 %v3532_v17 }
 0x1ee   : > { %v1357_v41 = vrot.slane %v3533_v26, 4  ;;  %v1407_v53 = vrot.slane %v3534_v38, 4 }
 0x211   : > { %v3527_v21 = vpop.permute.xlu1 %3526  ;;  %v3517_v22 = vpop.permute.xlu0 %3516 }
 0x212   : > { %v3529_v23 = vunpack.i.h.bf16 %v3527_v21  ;;  %v3528_v24 = vunpack.i.l.bf16 %v3527_v21  ;;  %v3518_v25 = vunpack.i.l.bf16 %v3517_v22  ;;  %v3519_v29 = vunpack.i.h.bf16 %v3517_v22 }
 0x214   : > { %v1589_v27 = vrot.slane %v3529_v23, 4  ;;  %v1539_v28 = vrot.slane %v3528_v24, 4  ;;  %v1541_v30 = vrot.slane %v3518_v25, 4 }
 0x216   : > { %v1590_v35 = vsel %vm1345_vm4, %v1589_v27, %v3519_v29  ;;  %v1540_v36 = vsel %vm1345_vm4, %v1539_v28, %v3518_v25  ;;  %v1542_v37 = vsel %vm1345_vm4, %v3528_v24, %v1541_v30 }
 0x217   : > { %v1594_v39 = vperm.slane %v1590_v35, %v4107_v18  ;;  %v1550_v40 = vperm.slane %v1542_v37, %v4107_v18  ;;  %v1546_v45 = vperm.slane %v1540_v36, %v4107_v18 }
 0x219   : > { %v3522_v47 = vpop.permute.xlu0 %3521  ;;  %v1327_v48 = vpop.permute.xlu1 %1326  ;;  %v1595_v54 = vrot.slane %v1594_v39, 4  ;;  %v1563_v55 = vrot.slane %v1550_v40, 4  ;;  %v1551_v2 = vrot.slane %v1546_v45, 4 }
 0x21a   : > { %v3524_v49 = vunpack.i.h.bf16 %v3522_v47  ;;  %v3523_v50 = vunpack.i.l.bf16 %v3522_v47  ;;  %v1358_v51 = vsel %vm1345_vm4, %v1357_v41, %v1327_v48  ;;  %v1359_v52 = vrot.slane %v1327_v48, 4 }
 0x21b   : > { %v1364_v56 = vperm.slane %v1358_v51, %v4107_v18 }
 0x21c   : > { %v1583_v57 = vrot.slane %v3524_v49, 4  ;;  %v1527_v59 = vrot.slane %v3523_v50, 4  ;;  %v1530_v60 = vsel %vm1345_vm4, %v3523_v50, %v1529_v42  ;;  %v1360_v61 = vsel %vm1345_vm4, %v3533_v26, %v1359_v52 }
 0x21d   : > { %v1538_v62 = vperm.slane %v1530_v60, %v4107_v18  ;;  %v1368_v63 = vperm.slane %v1360_v61, %v4107_v18  ;;  %v1369_v0 = vrot.slane %v1364_v56, 4  ;;  %v1372_v1 = vsel %vm1345_vm4, %v1364_v56, %v1371_v43 }
 0x21e   : > { %v1584_v3 = vsel %vm1345_vm4, %v1583_v57, %v4095_v10  ;;  %v1528_v5 = vsel %vm1345_vm4, %v1527_v59, %v4093_v9  ;;  %v1380_v6 = vperm.slane %v1372_v1, %v4120_v46 }
 0x21f   : > { %v1588_v7 = vperm.slane %v1584_v3, %v4107_v18  ;;  %v1534_v8 = vperm.slane %v1528_v5, %v4107_v18  ;;  %v1564_v11 = vsel %vm1345_vm4, %v1563_v55, %v1538_v62  ;;  %v1565_v12 = vrot.slane %v1538_v62, 4 }
 0x220   : > { %v1570_v13 = vperm.slane %v1564_v11, %v4120_v46  ;;  %v1370_v14 = vsel %vm1345_vm4, %v1369_v0, %v1352_v31  ;;  %v1381_v15 = vrot.slane %v1368_v63, 4  ;;  %v1384_v16 = vsel %vm1345_vm4, %v1368_v63, %v1383_v44 }
 0x221   : > { %v1552_v10 = vsel %vm1345_vm4, %v1551_v2, %v1534_v8  ;;  %v1553_v17 = vrot.slane %v1534_v8, 4  ;;  %v1566_v9 = vsel %vm1345_vm4, %v1550_v40, %v1565_v12  ;;  %v1596_v19 = vsel %vm1345_vm4, %v1595_v54, %v1588_v7  ;;  %v1329_v28 = vpop.permute.xlu0 %1328  ;;  %v1335_v50 = vpop.permute.xlu1 %1334 }
 0x222   : > { %v1558_v20 = vperm.slane %v1552_v10, %v4120_v46  ;;  %v1574_v21 = vperm.slane %v1566_v9, %v4120_v46  ;;  %v1579_v22 = vrot.slane %v1570_v13, 4  ;;  %v4146_v23 = vperm.slane %v1596_v19, %v4120_v46 }
 0x223   : > { %v1554_v24 = vsel %vm1345_vm4, %v1546_v45, %v1553_v17  ;;  %v1376_v25 = vperm.slane %v1370_v14, %v4120_v46  ;;  %v1382_v26 = vsel %vm1345_vm4, %v1381_v15, %v1356_v32  ;;  %v1392_v27 = vperm.slane %v1384_v16, %v4120_v46  ;;  %v3410_v15 = vld [vmem:[%s3930_s4 + $0x58] sm:$0xff] }
 0x224   : > { %v1562_v29 = vperm.slane %v1554_v24, %v4120_v46  ;;  %v1575_v30 = vrot.slane %v1558_v20, 4  ;;  %v1580_v31 = vsel %vm1345_vm4, 0.0, %v1579_v22  ;;  %v1581_v33 = vrot.slane %v1574_v21, 4  ;;  %1314 = vmatpush.bf16.msra.mxu2 %v3410_v15 }
 0x225   : > { %v1388_v34 = vperm.slane %v1382_v26, %v4120_v46  ;;  %v1393_v35 = vrot.slane %v1376_v25, 4  ;;  %v1395_v36 = vrot.slane %v1380_v6, 4  ;;  %v1399_v37 = vrot.slane %v1392_v27, 4 }
 0x226   : > { %v1577_v38 = vrot.slane %v1562_v29, 4  ;;  %v1582_v39 = vsel %vm1345_vm4, 0.0, %v1581_v33  ;;  %v1612_v40 = vsel %vm1345_vm4, %v1581_v33, %v1570_v13  ;;  %v1408_v32 = vsel %vm1345_vm4, %v1407_v53, %v1329_v28 }
 0x227   : > { %v1616_v41 = vperm.slane %v1612_v40, %v4107_v18  ;;  %v1617_v42 = vrot.slane %v1582_v39, 4  ;;  %v1394_v43 = vsel %vm1345_vm4, 0.0, %v1393_v35  ;;  %v1396_v44 = vsel %vm1345_vm4, 0.0, %v1395_v36 }
 0x228   : > { %v1578_v45 = vsel %vm1345_vm4, 0.0, %v1577_v38  ;;  %v1397_v47 = vrot.slane %v1388_v34, 4  ;;  %v1400_v48 = vsel %vm1345_vm4, 0.0, %v1399_v37  ;;  %v1419_v49 = vsel %vm1345_vm4, %v1395_v36, %v1376_v25 }
 0x229   : > { %v1606_v51 = vrot.slane %v1578_v45, 4  ;;  %v4165_v52 = vperm.slane %v1419_v49, %v4107_v18  ;;  %v1424_v53 = vrot.slane %v1396_v44, 4  ;;  %v1430_v54 = vsel %vm1345_vm4, %v1399_v37, %v1388_v34 }
 0x22a   : > { %v1398_v55 = vsel %vm1345_vm4, 0.0, %v1397_v47  ;;  %v4170_v56 = vperm.slane %v1430_v54, %v4107_v18  ;;  %v1435_v57 = vrot.slane %v1400_v48, 4  ;;  %v1412_v59 = vperm.slane %v1408_v32, %v4107_v18 }
 0x22b   : > { %v1425_v60 = vsel %vm1345_vm4, %v1424_v53, %v1394_v43  ;;  %v1443_v61 = vrot.slane %v4165_v52, 4  ;;  %v1401_v62 = vrot.slane %v1335_v50, 4  ;;  %v1576_v63 = vsel %vm1345_vm4, 0.0, %v1575_v30 }
 0x22c   : > { %v4177_v0 = vperm.slane %v1425_v60, %v4107_v18  ;;  %v1413_v1 = vrot.slane %v1412_v59, 4  ;;  %v1601_v2 = vsel %vm1345_vm4, %v1577_v38, %v1558_v20  ;;  %v1607_v3 = vsel %vm1345_vm4, %v1606_v51, %v1576_v63 }
 0x22d   : > { %v1402_v5 = vsel %vm1345_vm4, %v1401_v62, %v4088_v4  ;;  %v1605_v6 = vperm.slane %v1601_v2, %v4107_v18  ;;  %v1611_v7 = vperm.slane %v1607_v3, %v4107_v18  ;;  %v1618_v8 = vsel %vm1345_vm4, %v1617_v42, %v1580_v31 }
 0x22e   : > { %v1406_v11 = vperm.slane %v1402_v5, %v4107_v18  ;;  %v1622_v12 = vperm.slane %v1618_v8, %v4107_v18  ;;  %v1637_v13 = vrot.slane %v1616_v41, 4  ;;  %v1658_v14 = vperm.slane %v4146_v23, %v4107_v18 }
 0x22f   : > { %v1625_v16 = vrot.slane %v1605_v6, 4  ;;  %v1659_v10 = vrot.slane %v4146_v23, 4  ;;  %v1623_v17 = vrot.slane %v1611_v7, 4  ;;  %v1436_v4 = vsel %vm1345_vm4, %v1435_v57, %v1398_v55 }
 0x230   : > { %v1414_v9 = vsel %vm1345_vm4, %v1413_v1, %v1406_v11  ;;  %v1638_v19 = vsel %vm1345_vm4, %v1622_v12, %v1637_v13  ;;  %v1667_v20 = vrot.slane %v1658_v14, 4  ;;  %v1635_v21 = vrot.slane %v1622_v12, 4 }
 0x231   : > { %v1418_v22 = vperm.slane %v1414_v9, %v4120_v46  ;;  %v1626_v24 = vsel %vm1345_vm4, %v1611_v7, %v1625_v16  ;;  %v1646_v25 = vperm.slane %v1638_v19, %v4120_v46  ;;  %v1660_v26 = vsel %vm1345_vm4, 0.0, %v1659_v10 }
 0x232   : > { %v1634_v23 = vperm.slane %v1626_v24, %v4120_v46  ;;  %v1664_v27 = vperm.slane %v1660_v26, %v4107_v18  ;;  %v1624_v28 = vsel %vm1345_vm4, %v1623_v17, %v1605_v6  ;;  %v1636_v29 = vsel %vm1345_vm4, %v1635_v21, %v1616_v41 }
 0x233   : > { %v4204_v30 = vperm.slane %v1418_v22, %v4107_v18  ;;  %v1477_v31 = vrot.slane %v1418_v22, 4  ;;  %v1651_v33 = vrot.slane %v1646_v25, 4  ;;  %v1630_v34 = vperm.slane %v1624_v28, %v4120_v46  ;;  %v3408_v28 = vld [vmem:[%s3930_s4 + $0x48] sm:$0xff] }
 0x234   : > { %v1653_v35 = vrot.slane %v1634_v23, 4  ;;  %v1668_v36 = vsel %vm1345_vm4, %v1664_v27, %v1667_v20  ;;  %v1642_v37 = vperm.slane %v1636_v29, %v4120_v46  ;;  %v1665_v38 = vrot.slane %v1664_v27, 4  ;;  %v3409_v20 = vld [vmem:[%s3930_s4 + $0x50] sm:$0xff] }
 0x235   : > { %v1652_v39 = vsel %vm1345_vm4, %v1651_v33, %v1634_v23  ;;  %v1676_v40 = vperm.slane %v1668_v36, %v4120_v46  ;;  %v1649_v32 = vrot.slane %v1630_v34, 4  ;;  %v1440_v41 = vperm.slane %v1436_v4, %v4107_v18  ;;  %1315 = vmatpush.bf16.msra.mxu2 %v3409_v20 }
 0x236   : > { %v1685_v42 = vpack.c.bf16 %v1652_v39, %v1652_v39  ;;  %v1647_v43 = vrot.slane %v1642_v37, 4  ;;  %v1666_v44 = vsel %vm1345_vm4, %v1665_v38, %v1658_v14  ;;  %v1654_v45 = vsel %vm1345_vm4, %v1646_v25, %v1653_v35 }
 0x237   : > { %v1679_v47 = vrot.slane %v1676_v40, 4  ;;  %v1686_v48 = vpack.c.bf16 %v1676_v40, %v1676_v40  ;;  %v1672_v49 = vperm.slane %v1666_v44, %v4120_v46  ;;  %v1687_v50 = vpack.c.bf16 %v1654_v45, %v1654_v45 }
 0x238   : > { %v1939_v51 = vunpack.c.l.b16 %v1685_v42  ;;  %v1648_v53 = vsel %vm1345_vm4, %v1647_v43, %v1630_v34  ;;  %v1650_v54 = vsel %vm1345_vm4, %v1642_v37, %v1649_v32  ;;  %v1444_v55 = vsel %vm1345_vm4, %v4177_v0, %v1443_v61 }
 0x239   : > { %v1940_v57 = vunpack.c.l.b16 %v1686_v48  ;;  %v1681_v59 = vpack.c.bf16 %v1648_v53, %v1648_v53  ;;  %v1682_v60 = vpack.c.bf16 %v1672_v49, %v1672_v49  ;;  %v1680_v62 = vsel %vm1345_vm4, 0.0, %v1679_v47  ;;  %1316 = vmatpush.bf16.msra.mxu2 %v3408_v28 }
 0x23a   : > { %v1688_v63 = vpack.c.bf16 %v1680_v62, %v1680_v62  ;;  %v1969_v1 = vunpack.c.l.b16 %v1687_v50  ;;  %v1677_v2 = vrot.slane %v1672_v49, 4  ;;  %v1683_v3 = vpack.c.bf16 %v1650_v54, %v1650_v54 }
 0x23b   : > { %v1941_v5 = vpack.c.b16 %v1940_v57, %v1939_v51  ;;  %v1878_v6 = vunpack.c.l.b16 %v1681_v59  ;;  %v1879_v7 = vunpack.c.l.b16 %v1682_v60  ;;  %v1452_v8 = vperm.slane %v1444_v55, %v4120_v46 }
 0x23c   : > { %v1970_v11 = vunpack.c.l.b16 %v1688_v63  ;;  %v1678_v12 = vsel %vm1345_vm4, 0.0, %v1677_v2  ;;  %v1909_v13 = vunpack.c.l.b16 %v1683_v3  ;;  %v1455_v61 = vrot.slane %v4170_v56, 4 }
 0x23d   : > { %v1946_v14 = vsel %vm1881_vm5, %v1941_v5, 0  ;;  %v1880_v15 = vpack.c.b16 %v1879_v7, %v1878_v6  ;;  %v1684_v16 = vpack.c.bf16 %v1678_v12, %v1678_v12  ;;  %v1471_v10 = vrot.slane %v1452_v8, 4 }
 0x23e   : > { %1955 = vmatpush.bf16.xpose.msra.mxu0 %v1946_v14  ;;  %v1971_v17 = vpack.c.b16 %v1970_v11, %v1969_v1  ;;  %v1456_v4 = vsel %vm1345_vm4, %v1440_v41, %v1455_v61  ;;  %v1478_v9 = vsel %vm1345_vm4, 0.0, %v1477_v31  ;;  %v1485_v19 = vrot.slane %v4204_v30, 4 }
 0x23f   : > { %v1886_v21 = vsel %vm1881_vm5, %v1880_v15, 0  ;;  %v1910_v22 = vunpack.c.l.b16 %v1684_v16  ;;  %v1464_v24 = vperm.slane %v1456_v4, %v4120_v46  ;;  %v1482_v25 = vperm.slane %v1478_v9, %v4107_v18 }
 0x240   : > { %1895 = vmatpush.bf16.xpose.msra.mxu3 %v1886_v21  ;;  %v1976_v26 = vsel %vm1881_vm5, %v1971_v17, 0  ;;  %v1441_v23 = vrot.slane %v4177_v0, 4  ;;  %v1453_v27 = vrot.slane %v1440_v41, 4 }
 0x241   : > { %1985 = vmatpush.bf16.xpose.msra.mxu1 %v1976_v26  ;;  %v1911_v29 = vpack.c.b16 %v1910_v22, %v1909_v13  ;;  %v1469_v31 = vrot.slane %v1464_v24, 4  ;;  %v1486_v33 = vsel %vm1345_vm4, %v1482_v25, %v1485_v19  ;;  %v1483_v34 = vrot.slane %v1482_v25, 4 }
 0x242   : > { %v1494_v35 = vperm.slane %v1486_v33, %v4120_v46  ;;  %v1442_v36 = vsel %vm1345_vm4, %v1441_v23, %v4165_v52  ;;  %v1454_v37 = vsel %vm1345_vm4, %v1453_v27, %v4170_v56  ;;  %v1472_v0 = vsel %vm1345_vm4, %v1464_v24, %v1471_v10  ;;  %v3407_v52 = vld [vmem:[%s3930_s4 + $0x40] sm:$0xff]  ;;  %s3725_s4 = smov 48  }
 0x243   : > { %v1916_v38 = vsel %vm1881_vm5, %v1911_v29, 0  ;;  %v1470_v39 = vsel %vm1345_vm4, %v1469_v31, %v1452_v8  ;;  %v1460_v40 = vperm.slane %v1454_v37, %v4120_v46  ;;  %v1484_v43 = vsel %vm1345_vm4, %v1483_v34, %v4204_v30  ;;  %1317 = vmatpush.bf16.msra.mxu2 %v3407_v52  ;;  %v3567_v24 = vld [vmem:[%s3940_s30 + $0x2] ss:$0 sm:$0xff]  ;;  %s3724_s30 = smov 32  }
 0x244   : > { %v1497_v32 = vrot.slane %v1494_v35, 4  ;;  %v1503_v41 = vpack.c.bf16 %v1470_v39, %v1470_v39  ;;  %v1504_v42 = vpack.c.bf16 %v1494_v35, %v1494_v35  ;;  %v1448_v44 = vperm.slane %v1442_v36, %v4120_v46 }
 0x245   : > { %v1465_v56 = vrot.slane %v1460_v40, 4  ;;  %v1490_v45 = vperm.slane %v1484_v43, %v4120_v46  ;;  %v1505_v47 = vpack.c.bf16 %v1472_v0, %v1472_v0 }
 0x246   : > { %v1498_v48 = vsel %vm1345_vm4, 0.0, %v1497_v32  ;;  %v1934_v49 = vunpack.c.l.b16 %v1503_v41  ;;  %v1935_v50 = vunpack.c.l.b16 %v1504_v42  ;;  %3274 = vmatmul.msk.bf16.vlgmr.msra.gmra.mxu2 %vm1200_vm3, %v4077_v58  ;;  %v1467_v3 = vrot.slane %v1448_v44, 4 }
 0x247   : > { %v1506_v51 = vpack.c.bf16 %v1498_v48, %v1498_v48  ;;  %v1466_v53 = vsel %vm1345_vm4, %v1465_v56, %v1448_v44  ;;  %v1500_v54 = vpack.c.bf16 %v1490_v45, %v1490_v45  ;;  %v1964_v60 = vunpack.c.l.b16 %v1505_v47 }
 0x248   : > { %1925 = vmatpush.bf16.xpose.msrb.mxu3 %v1916_v38  ;;  %v1936_v55 = vpack.c.b16 %v1935_v50, %v1934_v49  ;;  %v1499_v57 = vpack.c.bf16 %v1466_v53, %v1466_v53  ;;  %v1495_v2 = vrot.slane %v1490_v45, 4  ;;  %v1468_v6 = vsel %vm1345_vm4, %v1460_v40, %v1467_v3 }
 0x249   : > { %v1965_v30 = vunpack.c.l.b16 %v1506_v51  ;;  %v1874_v59 = vunpack.c.l.b16 %v1500_v54  ;;  %v1501_v8 = vpack.c.bf16 %v1468_v6, %v1468_v6 }
 0x24a   : > { %3277 = vmatmul.msk.bf16.vlgmr.msra.gmra.mxu0 %vm1881_vm5, %v1936_v55  ;;  %v1873_v62 = vunpack.c.l.b16 %v1499_v57  ;;  %v1496_v5 = vsel %vm1345_vm4, 0.0, %v1495_v2 }
 0x24b   : > { %v1966_v63 = vpack.c.b16 %v1965_v30, %v1964_v60  ;;  %v1502_v7 = vpack.c.bf16 %v1496_v5, %v1496_v5  ;;  %v1904_v12 = vunpack.c.l.b16 %v1501_v8 }
 0x24c   : > { %v1875_v1 = vpack.c.b16 %v1874_v59, %v1873_v62 }
 0x24d   : > { %3278 = vmatmul.msk.bf16.vlgmr.msra.gmra.mxu1 %vm1881_vm5, %v1966_v63  ;;  %v1905_v11 = vunpack.c.l.b16 %v1502_v7 }
 0x24e   : > { %3275 = vmatmul.msk.bf16.vlgmr.msra.gmra.mxu3 %vm1881_vm5, %v1875_v1 }
 0x24f   : > { %v1906_v13 = vpack.c.b16 %v1905_v11, %v1904_v12 }
 0x25e   : > { %3276 = vmatmul.msk.bf16.vlgmr.msrb.gmra.mxu3 %vm1881_vm5, %v1906_v13 }
 0x2c7   : > { %v1957_v58 = vpop.f32.mrf.mxu0 }
 0x2c8   : > { %v2006_v61 = vsel %vm1992_vm6, %v1957_v58, -inf }
 0x2c9   : > { %2007 = vmax.xlane.f32.xlu1 %v2006_v61  ;;  %v1319_v20 = vpop.f32.mrf.mxu2 }
 0x2ca   : > { %v1987_v14 = vpop.f32.mrf.mxu1  ;;  %v4270_v27 = vadd.f32 %v3567_v24, %v1319_v20 }
 0x2cb   : > { %v2012_v15 = vsel %vm1992_vm6, %v1987_v14, -inf }
 0x2cc   : > { %2013 = vmax.xlane.f32.xlu2 %v2012_v15 }
 0x2cf   : > { %v4261_v16 = vpop.f32.mrf.mxu0 }
 0x2d0   : > { %v2009_v19 = vsel %vm1996_vm7, %v4261_v16, -inf }
 0x2d1   : > { %v1897_v10 = vpop.f32.mrf.mxu3  ;;  %v1321_v26 = vpop.f32.mrf.mxu2 }
 0x2d2   : > { %v1989_v17 = vpop.f32.mrf.mxu1  ;;  %v1993_v4 = vsel %vm1992_vm6, %v1897_v10, -inf  ;;  %v4272_v28 = vadd.f32 %v3567_v24, %v1321_v26  ;;  %v1711_v26 = vrot.slane %v4270_v27, 4 }
 0x2d3   : > { %1994 = vmax.xlane.f32.xlu1 %v1993_v4  ;;  %v2015_v9 = vsel %vm1996_vm7, %v1989_v17, -inf }
 0x2d4   : > { %2016 = vmax.xlane.f32.xlu0 %v2015_v9  ;;  %2010 = vmax.xlane.f32.xlu2 %v2009_v19  ;;  %v3540_v29 = vpack.i.bf16 %v4272_v28, %v4270_v27 }
 0x2d9   : > { %v1899_v21 = vpop.f32.mrf.mxu3 }
 0x2da   : > { %v1997_v22 = vsel %vm1996_vm7, %v1899_v21, -inf }
 0x2dc   : > { %1998 = vmax.xlane.f32.xlu2 %v1997_v22 }
 0x2e1   : > { %v1927_v25 = vpop.f32.mrf.mxu3 }
 0x2e2   : > { %v2000_v23 = vsel %vm1992_vm6, %v1927_v25, -inf }
 0x2e4   : > { %2001 = vmax.xlane.f32.xlu2 %v2000_v23 }
 0x2e9   : > { %v1929_v31 = vpop.f32.mrf.mxu3 }
 0x2ea   : > { %v2003_v33 = vsel %vm1996_vm7, %v1929_v31, -inf }
 0x2eb   : > { %2004 = vmax.xlane.f32.xlu0 %v2003_v33 }
 0x2ec   : > { %3541 = vrot.lane.b32.xlu1 %v3540_v29, %s3720_s25 }
 0x2fc   : > { %3546 = vrot.lane.b32.xlu2 %v3540_v29, %s3721_s2 }
 0x2ff   : > { %3536 = vrot.lane.b32.xlu0 %v3540_v29, %s3719_s7  ;;  %s4693_s7 = scalar_lea.vmem %s4623_s11, %s3917_s3 }
 0x33c   : > { %v2008_v34 = vpop.xlane.xlu1 %2007 }
 0x33d   : > { %v2022_v40 = vsub.f32 %v1957_v58, %v2008_v34 }
 0x33f   : > { %v2014_v35 = vpop.xlane.xlu2 %2013  ;;  %v2034_v43 = vmul.f32 1.442695, %v2022_v40 }
 0x340   : > { %v2024_v36 = vsub.f32 %v1987_v14, %v2014_v35 }
 0x342   : > { %v2038_v37 = vmul.f32 1.442695, %v2024_v36 }
 0x344   : > { %3575 = vpow2.f32 %v2038_v37 }
 0x346   : > { %v1995_v0 = vpop.xlane.xlu1 %1994 }
 0x347   : > { %v2018_v38 = vsub.f32 %v1897_v10, %v1995_v0  ;;  %v2011_v39 = vpop.xlane.xlu2 %2010  ;;  %v2017_v48 = vpop.xlane.xlu0 %2016 }
 0x348   : > { %v2025_v54 = vsub.f32 %v1989_v17, %v2017_v48  ;;  %v2023_v63 = vsub.f32 %v4261_v16, %v2011_v39 }
 0x349   : > { %v2026_v32 = vmul.f32 1.442695, %v2018_v38 }
 0x34a   : > { %v4280_v41 = vpop.eup %3575  ;;  %v2040_v59 = vmul.f32 1.442695, %v2025_v54  ;;  %v2036_v8 = vmul.f32 1.442695, %v2023_v63 }
 0x34b   : > { %3577 = vpow2.f32 %v2026_v32  ;;  %v2060_v42 = vsel %vm1992_vm6, %v4280_v41, 0.0 }
 0x34c   : > { %2061 = vadd.xlane.f32.xlu1 %v2060_v42  ;;  %3579 = vpow2.f32 %v2034_v43 }
 0x34f   : > { %v1999_v52 = vpop.xlane.xlu2 %1998 }
 0x350   : > { %v2019_v44 = vsub.f32 %v1899_v21, %v1999_v52 }
 0x351   : > { %v4284_v56 = vpop.eup %3577 }
 0x352   : > { %v2028_v45 = vmul.f32 1.442695, %v2019_v44  ;;  %v2042_v47 = vsel %vm1992_vm6, %v4284_v56, 0.0  ;;  %v4288_v49 = vpop.eup %3579 }
 0x353   : > { %2043 = vadd.xlane.f32.xlu2 %v2042_v47  ;;  %v2054_v57 = vsel %vm1992_vm6, %v4288_v49, 0.0 }
 0x354   : > { %3581 = vpow2.f32 %v2028_v45 }
 0x357   : > { %v2002_v50 = vpop.xlane.xlu2 %2001 }
 0x358   : > { %v2020_v51 = vsub.f32 %v1927_v25, %v2002_v50 }
 0x35a   : > { %v4290_v53 = vpop.eup %3581  ;;  %v2030_v55 = vmul.f32 1.442695, %v2020_v51 }
 0x35b   : > { %2055 = vadd.xlane.f32.xlu2 %v2054_v57  ;;  %v2045_v30 = vsel %vm1996_vm7, %v4290_v53, 0.0 }
 0x35c   : > { %3583 = vpow2.f32 %v2030_v55  ;;  %2046 = vadd.xlane.f32.xlu0 %v2045_v30 }
 0x35d   : > { %3585 = vpow2.f32 %v2040_v59 }
 0x35e   : > { %v2005_v60 = vpop.xlane.xlu0 %2004  ;;  %v3542_v6 = vpop.permute.xlu1 %3541 }
 0x35f   : > { %v2021_v62 = vsub.f32 %v1929_v31, %v2005_v60  ;;  %v3547_v2 = vpop.permute.xlu2 %3546  ;;  %v3544_v11 = vunpack.i.h.bf16 %v3542_v6  ;;  %v3543_v12 = vunpack.i.l.bf16 %v3542_v6 }
 0x360   : > { %v3548_v7 = vunpack.i.l.bf16 %v3547_v2  ;;  %v3549_v15 = vunpack.i.h.bf16 %v3547_v2 }
 0x361   : > { %v2032_v1 = vmul.f32 1.442695, %v2021_v62  ;;  %v1771_v16 = vrot.slane %v3544_v11, 4  ;;  %v1721_v10 = vrot.slane %v3543_v12, 4 }
 0x362   : > { %v4297_v3 = vpop.eup %3583  ;;  %v1723_v58 = vrot.slane %v3548_v7, 4 }
 0x363   : > { %3587 = vpow2.f32 %v2032_v1  ;;  %v2048_v5 = vsel %vm1992_vm6, %v4297_v3, 0.0  ;;  %v4301_v13 = vpop.eup %3585  ;;  %v1722_v9 = vsel %vm1345_vm4, %v1721_v10, %v3548_v7  ;;  %v1772_v19 = vsel %vm1345_vm4, %v1771_v16, %v3549_v15 }
 0x364   : > { %2049 = vadd.xlane.f32.xlu0 %v2048_v5  ;;  %3589 = vpow2.f32 %v2036_v8  ;;  %v2063_v17 = vsel %vm1996_vm7, %v4301_v13, 0.0  ;;  %v1724_v4 = vsel %vm1345_vm4, %v3543_v12, %v1723_v58  ;;  %v1728_v22 = vperm.slane %v1722_v9, %v4107_v18 }
 0x365   : > { %v1732_v21 = vperm.slane %v1724_v4, %v4107_v18  ;;  %v1776_v24 = vperm.slane %v1772_v19, %v4107_v18 }
 0x366   : > { %v1733_v37 = vrot.slane %v1728_v22, 4 }
 0x367   : > { %v1745_v33 = vrot.slane %v1732_v21, 4  ;;  %v1777_v0 = vrot.slane %v1776_v24, 4 }
 0x369   : > { %v4303_v61 = vpop.eup %3587 }
 0x36a   : > { %v2051_v14 = vsel %vm1996_vm7, %v4303_v61, 0.0  ;;  %v4312_v20 = vpop.eup %3589 }
 0x36b   : > { %2052 = vadd.xlane.f32.xlu1 %v2051_v14  ;;  %v2057_v31 = vsel %vm1996_vm7, %v4312_v20, 0.0 }
 0x36c   : > { %2064 = vadd.xlane.f32.xlu0 %v2063_v17 }
 0x371   : > { %v3537_v25 = vpop.permute.xlu0 %3536 }
 0x372   : > { %v3539_v23 = vunpack.i.h.bf16 %v3537_v25  ;;  %v3538_v29 = vunpack.i.l.bf16 %v3537_v25 }
 0x373   : > { %2058 = vadd.xlane.f32.xlu1 %v2057_v31 }
 0x374   : > { %v1765_v34 = vrot.slane %v3539_v23, 4  ;;  %v1709_v35 = vrot.slane %v3538_v29, 4  ;;  %v1712_v36 = vsel %vm1345_vm4, %v3538_v29, %v1711_v26 }
 0x375   : > { %v1720_v38 = vperm.slane %v1712_v36, %v4107_v18 }
 0x376   : > { %v1766_v39 = vsel %vm1345_vm4, %v1765_v34, %v4272_v28  ;;  %v1710_v40 = vsel %vm1345_vm4, %v1709_v35, %v4270_v27 }
 0x377   : > { %v1770_v32 = vperm.slane %v1766_v39, %v4107_v18  ;;  %v1716_v42 = vperm.slane %v1710_v40, %v4107_v18  ;;  %v1746_v43 = vsel %vm1345_vm4, %v1745_v33, %v1720_v38  ;;  %v1747_v52 = vrot.slane %v1720_v38, 4 }
 0x378   : > { %v1752_v44 = vperm.slane %v1746_v43, %v4120_v46 }
 0x379   : > { %v1778_v45 = vsel %vm1345_vm4, %v1777_v0, %v1770_v32  ;;  %v1734_v47 = vsel %vm1345_vm4, %v1733_v37, %v1716_v42  ;;  %v1735_v48 = vrot.slane %v1716_v42, 4  ;;  %v1748_v50 = vsel %vm1345_vm4, %v1732_v21, %v1747_v52 }
 0x37a   : > { %v1782_v28 = vperm.slane %v1778_v45, %v4120_v46  ;;  %v1740_v27 = vperm.slane %v1734_v47, %v4120_v46  ;;  %v1756_v51 = vperm.slane %v1748_v50, %v4120_v46  ;;  %v1761_v54 = vrot.slane %v1752_v44, 4 }
 0x37b   : > { %v1736_v55 = vsel %vm1345_vm4, %v1728_v22, %v1735_v48 }
 0x37c   : > { %v1841_v57 = vrot.slane %v1782_v28, 4  ;;  %v1744_v30 = vperm.slane %v1736_v55, %v4120_v46  ;;  %v1763_v59 = vrot.slane %v1756_v51, 4  ;;  %v1840_v60 = vperm.slane %v1782_v28, %v4107_v18 }
 0x37d   : > { %v1757_v62 = vrot.slane %v1740_v27, 4  ;;  %v1762_v1 = vsel %vm1345_vm4, 0.0, %v1761_v54 }
 0x37e   : > { %v1759_v63 = vrot.slane %v1744_v30, 4  ;;  %v1842_v2 = vsel %vm1345_vm4, 0.0, %v1841_v57  ;;  %v1764_v5 = vsel %vm1345_vm4, 0.0, %v1763_v59  ;;  %v1794_v6 = vsel %vm1345_vm4, %v1763_v59, %v1752_v44 }
 0x37f   : > { %v1846_v7 = vperm.slane %v1842_v2, %v4107_v18  ;;  %v1849_v8 = vrot.slane %v1840_v60, 4  ;;  %v1798_v12 = vperm.slane %v1794_v6, %v4107_v18  ;;  %v1799_v58 = vrot.slane %v1764_v5, 4 }
 0x380   : > { %v1760_v11 = vsel %vm1345_vm4, 0.0, %v1759_v63  ;;  %v1783_v14 = vsel %vm1345_vm4, %v1759_v63, %v1740_v27  ;;  %v1758_v4 = vsel %vm1345_vm4, 0.0, %v1757_v62 }
 0x381   : > { %v1788_v15 = vrot.slane %v1760_v11, 4  ;;  %v1787_v16 = vperm.slane %v1783_v14, %v4107_v18  ;;  %v1850_v10 = vsel %vm1345_vm4, %v1846_v7, %v1849_v8  ;;  %v1847_v17 = vrot.slane %v1846_v7, 4 }
 0x382   : > { %v1800_v9 = vsel %vm1345_vm4, %v1799_v58, %v1762_v1  ;;  %v1819_v19 = vrot.slane %v1798_v12, 4  ;;  %v1858_v21 = vperm.slane %v1850_v10, %v4120_v46 }
 0x383   : > { %v1789_v22 = vsel %vm1345_vm4, %v1788_v15, %v1758_v4  ;;  %v1804_v24 = vperm.slane %v1800_v9, %v4107_v18  ;;  %v1807_v25 = vrot.slane %v1787_v16, 4  ;;  %v1848_v26 = vsel %vm1345_vm4, %v1847_v17, %v1840_v60 }
 0x384   : > { %v1793_v23 = vperm.slane %v1789_v22, %v4107_v18  ;;  %v1861_v29 = vrot.slane %v1858_v21, 4  ;;  %v1854_v31 = vperm.slane %v1848_v26, %v4120_v46  ;;  %v1868_v44 = vpack.c.bf16 %v1858_v21, %v1858_v21 }
 0x385   : > { %v1820_v33 = vsel %vm1345_vm4, %v1804_v24, %v1819_v19  ;;  %v1817_v34 = vrot.slane %v1804_v24, 4 }
 0x386   : > { %v1808_v35 = vsel %vm1345_vm4, %v1793_v23, %v1807_v25  ;;  %v1828_v36 = vperm.slane %v1820_v33, %v4120_v46  ;;  %v1805_v37 = vrot.slane %v1793_v23, 4  ;;  %v1859_v39 = vrot.slane %v1854_v31, 4 }
 0x387   : > { %v1816_v0 = vperm.slane %v1808_v35, %v4120_v46  ;;  %v1818_v38 = vsel %vm1345_vm4, %v1817_v34, %v1798_v12  ;;  %v1862_v43 = vsel %vm1345_vm4, 0.0, %v1861_v29  ;;  %v1864_v54 = vpack.c.bf16 %v1854_v31, %v1854_v31 }
 0x388   : > { %v1833_v40 = vrot.slane %v1828_v36, 4  ;;  %v1806_v32 = vsel %vm1345_vm4, %v1805_v37, %v1787_v16  ;;  %v1824_v42 = vperm.slane %v1818_v38, %v4120_v46  ;;  %v1870_v50 = vpack.c.bf16 %v1862_v43, %v1862_v43 }
 0x389   : > { %v1835_v52 = vrot.slane %v1816_v0, 4  ;;  %v1812_v45 = vperm.slane %v1806_v32, %v4120_v46  ;;  %v1860_v28 = vsel %vm1345_vm4, 0.0, %v1859_v39  ;;  %v2159_v62 = vunpack.c.l.b16 %v1868_v44 }
 0x38a   : > { %v1834_v47 = vsel %vm1345_vm4, %v1833_v40, %v1816_v0  ;;  %v1829_v48 = vrot.slane %v1824_v42, 4  ;;  %v1866_v59 = vpack.c.bf16 %v1860_v28, %v1860_v28  ;;  %v2189_v5 = vunpack.c.l.b16 %v1870_v50 }
 0x38b   : > { %v1867_v27 = vpack.c.bf16 %v1834_v47, %v1834_v47  ;;  %v1831_v51 = vrot.slane %v1812_v45, 4  ;;  %v1836_v55 = vsel %vm1345_vm4, %v1828_v36, %v1835_v52  ;;  %v2098_v11 = vunpack.c.l.b16 %v1864_v54 }
 0x38c   : > { %v1830_v57 = vsel %vm1345_vm4, %v1829_v48, %v1812_v45  ;;  %v1869_v30 = vpack.c.bf16 %v1836_v55, %v1836_v55  ;;  %v2129_v14 = vunpack.c.l.b16 %v1866_v59 }
 0x38d   : > { %v2158_v60 = vunpack.c.l.b16 %v1867_v27  ;;  %v1863_v63 = vpack.c.bf16 %v1830_v57, %v1830_v57  ;;  %v1832_v1 = vsel %vm1345_vm4, %v1824_v42, %v1831_v51 }
 0x38e   : > { %v2188_v2 = vunpack.c.l.b16 %v1869_v30  ;;  %v1865_v6 = vpack.c.bf16 %v1832_v1, %v1832_v1 }
 0x38f   : > { %v2160_v7 = vpack.c.b16 %v2159_v62, %v2158_v60  ;;  %v2097_v8 = vunpack.c.l.b16 %v1863_v63 }
 0x390   : > { %v2190_v12 = vpack.c.b16 %v2189_v5, %v2188_v2  ;;  %v2128_v58 = vunpack.c.l.b16 %v1865_v6 }
 0x391   : > { %v2165_v15 = vsel %vm2103_vm8, %v2160_v7, 0  ;;  %v2099_v16 = vpack.c.b16 %v2098_v11, %v2097_v8 }
 0x392   : > { %2174 = vmatpush.bf16.msrb.mxu0 %v2165_v15  ;;  %v2195_v10 = vsel %vm2103_vm8, %v2190_v12, 0  ;;  %v2130_v17 = vpack.c.b16 %v2129_v14, %v2128_v58 }
 0x393   : > { %v2105_v4 = vsel %vm2103_vm8, %v2099_v16, 0  ;;  %2204 = vmatpush.bf16.msrb.mxu1 %v2195_v10 }
 0x394   : > { %2114 = vmatpush.bf16.msrb.mxu2 %v2105_v4  ;;  %v2135_v9 = vsel %vm2103_vm8, %v2130_v17, 0 }
 0x395   : > { %2144 = vmatpush.bf16.msra.mxu3 %v2135_v9 }
 0x3bf   : > { %v2062_v26 = vpop.xlane.xlu1 %2061 }
 0x3c6   : > { %v2044_v19 = vpop.xlane.xlu2 %2043 }
 0x3c7   : > { %3591 = vrcp.f32 %v2044_v19 }
 0x3cd   : > { %v3592_v22 = vpop.eup %3591 }
 0x3ce   : > { %v2074_v24 = vmul.f32 %v3592_v22, %v4284_v56  ;;  %v2056_v37 = vpop.xlane.xlu2 %2055 }
 0x3cf   : > { %v2047_v21 = vpop.xlane.xlu0 %2046 }
 0x3d0   : > { %3593 = vrcp.f32 %v2047_v21  ;;  %v2082_v23 = vpack.c.bf16 %v2074_v24, %v2074_v24 }
 0x3d2   : > { %v2092_v34 = vunpack.c.l.b16 %v2082_v23 }
 0x3d6   : > { %v3594_v25 = vpop.eup %3593 }
 0x3d7   : > { %v2075_v29 = vmul.f32 %v3594_v25, %v4290_v53  ;;  %v2050_v31 = vpop.xlane.xlu0 %2049 }
 0x3d8   : > { %3595 = vrcp.f32 %v2050_v31 }
 0x3d9   : > { %v2083_v33 = vpack.c.bf16 %v2075_v29, %v2075_v29  ;;  %3597 = vrcp.f32 %v2062_v26 }
 0x3db   : > { %v2093_v35 = vunpack.c.l.b16 %v2083_v33 }
 0x3dd   : > { %v2094_v36 = vpack.c.b16 %v2093_v35, %v2092_v34 }
 0x3de   : > { %v2053_v0 = vpop.xlane.xlu1 %2052  ;;  %v3596_v38 = vpop.eup %3595 }
 0x3df   : > { %3599 = vrcp.f32 %v2053_v0  ;;  %v2065_v39 = vpop.xlane.xlu0 %2064  ;;  %3279 = vmatmul.msk.bf16.vlgmr.msrb.gmra.mxu2 %vm1992_vm6, %v2094_v36  ;;  %v3598_v56 = vpop.eup %3597  ;;  %v2076_v40 = vmul.f32 %v3596_v38, %v4297_v3 }
 0x3e0   : > { %3601 = vrcp.f32 %v2065_v39  ;;  %v2080_v53 = vmul.f32 %v3598_v56, %v4280_v41 }
 0x3e1   : > { %3603 = vrcp.f32 %v2056_v37  ;;  %v2084_v43 = vpack.c.bf16 %v2076_v40, %v2076_v40 }
 0x3e2   : > { %v2088_v47 = vpack.c.bf16 %v2080_v53, %v2080_v53 }
 0x3e3   : > { %v2123_v51 = vunpack.c.l.b16 %v2084_v43 }
 0x3e4   : > { %v2183_v3 = vunpack.c.l.b16 %v2088_v47 }
 0x3e5   : > { %v3600_v32 = vpop.eup %3599 }
 0x3e6   : > { %v3602_v42 = vpop.eup %3601  ;;  %v2077_v52 = vmul.f32 %v3600_v32, %v4303_v61  ;;  %v2059_v44 = vpop.xlane.xlu1 %2058 }
 0x3e7   : > { %v3604_v45 = vpop.eup %3603  ;;  %v2081_v48 = vmul.f32 %v3602_v42, %v4301_v13  ;;  %3605 = vrcp.f32 %v2059_v44 }
 0x3e8   : > { %v2085_v50 = vpack.c.bf16 %v2077_v52, %v2077_v52  ;;  %v2078_v27 = vmul.f32 %v3604_v45, %v4288_v49 }
 0x3e9   : > { %v2089_v28 = vpack.c.bf16 %v2081_v48, %v2081_v48 }
 0x3ea   : > { %v2124_v54 = vunpack.c.l.b16 %v2085_v50  ;;  %v2086_v59 = vpack.c.bf16 %v2078_v27, %v2078_v27 }
 0x3eb   : > { %v2184_v55 = vunpack.c.l.b16 %v2089_v28 }
 0x3ec   : > { %v2125_v41 = vpack.c.b16 %v2124_v54, %v2123_v51  ;;  %v2153_v60 = vunpack.c.l.b16 %v2086_v59 }
 0x3ed   : > { %v3606_v57 = vpop.eup %3605  ;;  %v2185_v30 = vpack.c.b16 %v2184_v55, %v2183_v3 }
 0x3ee   : > { %v2079_v61 = vmul.f32 %v3606_v57, %v4312_v20  ;;  %3280 = vmatmul.msk.bf16.vlgmr.msra.gmra.mxu3 %vm1992_vm6, %v2125_v41 }
 0x3ef   : > { %3282 = vmatmul.msk.bf16.vlgmr.msrb.gmra.mxu1 %vm1992_vm6, %v2185_v30 }
 0x3f0   : > { %v2087_v13 = vpack.c.bf16 %v2079_v61, %v2079_v61 }
 0x3f2   : > { %v2154_v62 = vunpack.c.l.b16 %v2087_v13 }
 0x3f4   : > { %v2155_v63 = vpack.c.b16 %v2154_v62, %v2153_v60 }
 0x3f6   : > { %3281 = vmatmul.msk.bf16.vlgmr.msrb.gmra.mxu0 %vm1992_vm6, %v2155_v63 }
 0x462   : > { %v2116_v1 = vpop.f32.mrf.mxu2 }
 0x463   : > { %v2213_v6 = vrot.slane %v2116_v1, 4 }
 0x46a   : > { %v2118_v53 = vpop.f32.mrf.mxu2 }
 0x46c   : > { %v2206_v49 = vpop.f32.mrf.mxu1 }
 0x46d   : > { %v2223_v2 = vrot.slane %v2206_v49, 4 }
 0x471   : > { %v2146_v5 = vpop.f32.mrf.mxu3 }
 0x472   : > { %v2224_v7 = vsel %vm1345_vm4, %v2223_v2, %v2146_v5  ;;  %v2225_v8 = vrot.slane %v2146_v5, 4 }
 0x473   : > { %v2230_v20 = vperm.slane %v2224_v7, %v4107_v18  ;;  %v2176_v11 = vpop.f32.mrf.mxu0 }
 0x474   : > { %v2226_v12 = vsel %vm1345_vm4, %v2206_v49, %v2225_v8  ;;  %v2211_v58 = vrot.slane %v2176_v11, 4  ;;  %v2214_v14 = vsel %vm1345_vm4, %v2176_v11, %v2213_v6  ;;  %v2208_v10 = vpop.f32.mrf.mxu1 }
 0x475   : > { %v2234_v15 = vperm.slane %v2226_v12, %v4107_v18  ;;  %v2222_v16 = vperm.slane %v2214_v14, %v4107_v18  ;;  %v2235_v4 = vrot.slane %v2230_v20, 4  ;;  %v2273_v22 = vrot.slane %v2208_v10, 4 }
 0x476   : > { %v2212_v17 = vsel %vm1345_vm4, %v2211_v58, %v2116_v1 }
 0x477   : > { %v2247_v9 = vrot.slane %v2234_v15, 4  ;;  %v2218_v19 = vperm.slane %v2212_v17, %v4107_v18  ;;  %v2249_v21 = vrot.slane %v2222_v16, 4 }
 0x479   : > { %v2236_v24 = vsel %vm1345_vm4, %v2235_v4, %v2218_v19  ;;  %v2237_v25 = vrot.slane %v2218_v19, 4  ;;  %v2248_v26 = vsel %vm1345_vm4, %v2247_v9, %v2222_v16  ;;  %v2250_v23 = vsel %vm1345_vm4, %v2234_v15, %v2249_v21  ;;  %v2148_v29 = vpop.f32.mrf.mxu3 }
 0x47a   : > { %v2242_v31 = vperm.slane %v2236_v24, %v4120_v46  ;;  %v2254_v33 = vperm.slane %v2248_v26, %v4120_v46  ;;  %v2258_v34 = vperm.slane %v2250_v23, %v4120_v46  ;;  %v2274_v35 = vsel %vm1345_vm4, %v2273_v22, %v2148_v29 }
 0x47b   : > { %v2238_v36 = vsel %vm1345_vm4, %v2230_v20, %v2237_v25  ;;  %v2278_v37 = vperm.slane %v2274_v35, %v4107_v18  ;;  %v2178_v0 = vpop.f32.mrf.mxu0 }
 0x47c   : > { %v2246_v38 = vperm.slane %v2238_v36, %v4120_v46  ;;  %v2263_v39 = vrot.slane %v2254_v33, 4  ;;  %v2265_v56 = vrot.slane %v2258_v34, 4  ;;  %v2267_v40 = vrot.slane %v2178_v0, 4 }
 0x47d   : > { %v2259_v32 = vrot.slane %v2242_v31, 4  ;;  %v2279_v52 = vrot.slane %v2278_v37, 4 }
 0x47e   : > { %v2261_v42 = vrot.slane %v2246_v38, 4  ;;  %v2266_v43 = vsel %vm1345_vm4, 0.0, %v2265_v56  ;;  %v2264_v44 = vsel %vm1345_vm4, 0.0, %v2263_v39  ;;  %v2296_v45 = vsel %vm1345_vm4, %v2265_v56, %v2254_v33  ;;  %v3413_v38 = vld [vmem:[%s3935_s0 + $0x10] sm:$0xff]  ;;  %v3412_v39 = vld [vmem:[%s3935_s0 + $0x8] sm:$0xff]  ;;  %v3411_v56 = vld [vmem:[%s3935_s0] sm:$0xff] }
 0x47f   : > { %v2301_v47 = vrot.slane %v2266_v43, 4  ;;  %v2268_v48 = vsel %vm1345_vm4, %v2267_v40, %v2118_v53  ;;  %v2300_v27 = vperm.slane %v2296_v45, %v4107_v18  ;;  %v2260_v41 = vsel %vm1345_vm4, 0.0, %v2259_v32 }
 0x480   : > { %v2262_v50 = vsel %vm1345_vm4, 0.0, %v2261_v42  ;;  %v2285_v28 = vsel %vm1345_vm4, %v2261_v42, %v2242_v31  ;;  %v2272_v51 = vperm.slane %v2268_v48, %v4107_v18 }
 0x481   : > { %v2290_v54 = vrot.slane %v2262_v50, 4  ;;  %v2302_v3 = vsel %vm1345_vm4, %v2301_v47, %v2264_v44  ;;  %v2289_v55 = vperm.slane %v2285_v28, %v4107_v18  ;;  %v2321_v30 = vrot.slane %v2300_v27, 4 }
 0x482   : > { %v2306_v57 = vperm.slane %v2302_v3, %v4107_v18  ;;  %v2280_v59 = vsel %vm1345_vm4, %v2279_v52, %v2272_v51 }
 0x483   : > { %v2284_v61 = vperm.slane %v2280_v59, %v4120_v46  ;;  %v2291_v13 = vsel %vm1345_vm4, %v2290_v54, %v2260_v41  ;;  %v2309_v60 = vrot.slane %v2289_v55, 4  ;;  %v3568_v41 = vld [vmem:[%s4691_s23] ss:$0 sm:$0xff] }
 0x484   : > { %v2295_v62 = vperm.slane %v2291_v13, %v4107_v18  ;;  %v2322_v63 = vsel %vm1345_vm4, %v2306_v57, %v2321_v30  ;;  %v2319_v49 = vrot.slane %v2306_v57, 4  ;;  %v1158_v13 = vld [vmem:[#allocation2 + $0x4] sm:$0x1] }
 0x485   : > { %v2343_v1 = vrot.slane %v2284_v61, 4  ;;  %v2330_v2 = vperm.slane %v2322_v63, %v4120_v46  ;;  %v2342_v5 = vperm.slane %v2284_v61, %v4107_v18 }
 0x486   : > { %v2310_v6 = vsel %vm1345_vm4, %v2295_v62, %v2309_v60  ;;  %v2307_v7 = vrot.slane %v2295_v62, 4  ;;  %v2320_v8 = vsel %vm1345_vm4, %v2319_v49, %v2300_v27  ;;  %v2452_v62 = vunpack.c.l.bf16 %v1158_v13 }
 0x487   : > { %v2318_v20 = vperm.slane %v2310_v6, %v4120_v46  ;;  %v2344_v11 = vsel %vm1345_vm4, 0.0, %v2343_v1  ;;  %v2351_v12 = vrot.slane %v2342_v5, 4  ;;  %v2335_v58 = vrot.slane %v2330_v2, 4 }
 0x488   : > { %v2348_v14 = vperm.slane %v2344_v11, %v4107_v18  ;;  %v2308_v15 = vsel %vm1345_vm4, %v2307_v7, %v2289_v55  ;;  %v2326_v16 = vperm.slane %v2320_v8, %v4120_v46  ;;  %v1157_v55 = vld [vmem:[#allocation2] sm:$0xf] }
 0x489   : > { %v2314_v10 = vperm.slane %v2308_v15, %v4120_v46  ;;  %v2337_v21 = vrot.slane %v2318_v20, 4  ;;  %v2336_v22 = vsel %vm1345_vm4, %v2335_v58, %v2318_v20  ;;  %v2451_v57 = vunpack.c.l.bf16 %v1157_v55 }
 0x48a   : > { %v2349_v17 = vrot.slane %v2348_v14, 4  ;;  %v2352_v4 = vsel %vm1345_vm4, %v2348_v14, %v2351_v12  ;;  %v2331_v9 = vrot.slane %v2326_v16, 4 }
 0x48b   : > { %v2360_v19 = vperm.slane %v2352_v4, %v4120_v46  ;;  %v2333_v23 = vrot.slane %v2314_v10, 4  ;;  %v2338_v31 = vsel %vm1345_vm4, %v2330_v2, %v2337_v21 }
 0x48c   : > { %v2350_v24 = vsel %vm1345_vm4, %v2349_v17, %v2342_v5  ;;  %v2332_v25 = vsel %vm1345_vm4, %v2331_v9, %v2314_v10  ;;  %v3727_v5 = vmov 64.0  }
 0x48d   : > { %v3555_v18 = vpack.i.bf16 %v2360_v19, %v2336_v22  ;;  %v2363_v26 = vrot.slane %v2360_v19, 4  ;;  %v2356_v29 = vperm.slane %v2350_v24, %v4120_v46  ;;  %v2334_v36 = vsel %vm1345_vm4, %v2326_v16, %v2333_v23  ;;  %v3414_v46 = vld [vmem:[%s3935_s0 + $0x18] sm:$0xff] }
 0x48e   : > { %2441 = vmatpush.bf16.msra.mxu2 %v3414_v46  ;;  %3607 = vrcp.f32 %v3727_v5 }
 0x48f   : > { %3556 = vrot.lane.b32.xlu2 %v3555_v18, %s3724_s30  ;;  %v2364_v33 = vsel %vm1345_vm4, 0.0, %v2363_v26  ;;  %v2361_v34 = vrot.slane %v2356_v29, 4  ;;  %v3417_v26 = vld [vmem:[%s3957_s8 + $0x10] sm:$0xff]  ;;  %s4694_s30 = scalar_lea.vmem %s4625_s13, %s3917_s3 }
 0x490   : > { %v3560_v35 = vpack.i.bf16 %v2364_v33, %v2338_v31 }
 0x491   : > { %v2362_v37 = vsel %vm1345_vm4, 0.0, %v2361_v34 }
 0x492   : > { %3561 = vrot.lane.b32.xlu1 %v3560_v35, %s3725_s4  ;;  %v3550_v0 = vpack.i.bf16 %v2362_v37, %v2334_v36  ;;  %2442 = vmatpush.bf16.msra.mxu2 %v3413_v38  ;;  %v3415_v36 = vld [vmem:[%s3957_s8] sm:$0xff] }
 0x494   : > { %3551 = vrot.lane.b32.xlu0 %v3550_v0, %s3726_s21  ;;  %v3608_v6 = vpop.eup %3607  ;;  %s4695_s21 = scalar_lea.vmem %s4627_s15, %s3917_s3  ;;  %s4696_s3 = sld [smem:[#allocation8_spill]] }
 0x495   : > { %v2465_v7 = vmul.f32 64.0, %v3608_v6  ;;  %vm2469_vm12 = vweird.f32 %v3608_v6 }
 0x496   : > { %2443 = vmatpush.bf16.msra.mxu2 %v3412_v39 }
 0x497   : > { %v2466_v8 = vsub.f32 1.0, %v2465_v7 }
 0x499   : > { %v2467_v20 = vmul.f32 %v3608_v6, %v2466_v8 }
 0x49a   : > { %2444 = vmatpush.bf16.msra.mxu2 %v3411_v56  ;;  %p3351_p1 = scmp.ne.s32.totalorder %s4696_s3, 1 }
 0x49b   : > { %v2468_v11 = vadd.f32 %v3608_v6, %v2467_v20  ;;  %v3425_v20 = vld [vmem:[%s3971_s1 + $0x30] sm:$0xff]  ;;  %s4697_s24 = sld [smem:[#allocation29_spill]] (!%p3351_p1) }
 0x49c   : > { %s4698_s4 = sld [smem:[#allocation27_spill]] (!%p3351_p1) }
 0x49d   : > { %v4456_v12 = vsel %vm2469_vm12, %v3608_v6, %v2468_v11  ;;  %s4699_s18 = sld [smem:[#allocation28_spill]] (!%p3351_p1) }
 0x49e   : > { %s4700_s3 = sld [smem:[#allocation30_spill]] (!%p3351_p1) }
 0x4e9   : > { %v3557_v40 = vpop.permute.xlu2 %3556 }
 0x4ea   : > { %v3559_v52 = vunpack.i.h.bf16 %v3557_v40  ;;  %v3558_v44 = vunpack.i.l.bf16 %v3557_v40 }
 0x504   : > { %v3562_v53 = vpop.permute.xlu1 %3561 }
 0x505   : > { %v3564_v45 = vunpack.i.h.bf16 %v3562_v53  ;;  %v3563_v47 = vunpack.i.l.bf16 %v3562_v53 }
 0x506   : > { %v3552_v32 = vpop.permute.xlu0 %3551 }
 0x507   : > { %v3554_v42 = vunpack.i.h.bf16 %v3552_v32  ;;  %v3553_v43 = vunpack.i.l.bf16 %v3552_v32 }
 0x509   : > { %v2390_v48 = vsel %vm1881_vm5, %v2356_v29, %v3554_v42  ;;  %v2389_v50 = vsel %vm1881_vm5, %v2332_v25, %v3553_v43  ;;  %v3418_v25 = vld [vmem:[%s3957_s8 + $0x18] sm:$0xff]  ;;  %v3416_v29 = vld [vmem:[%s3957_s8 + $0x8] sm:$0xff]  ;;  %v3569_v43 = vld [vmem:[%s4692_s29] ss:$0 sm:$0xff] }
 0x50a   : > { %v2393_v28 = vsel %vm2391_vm9, %v2390_v48, %v3559_v52  ;;  %v2392_v27 = vsel %vm2391_vm9, %v2389_v50, %v3558_v44  ;;  %2563 = vmatpush.bf16.msrb.mxu3 %v3418_v25 }
 0x50b   : > { %v2396_v51 = vsel %vm2394_vm10, %v2393_v28, %v3564_v45  ;;  %v2395_v54 = vsel %vm2394_vm10, %v2392_v27, %v3563_v47  ;;  %v3570_v47 = vld [vmem:[%s4693_s7] ss:$0 sm:$0xff] }
 0x50c   : > { %v2397_v3 = vpack.c.bf16 %v2396_v51, %v2395_v54 }
 0x50e   : > { %3299 = vmatmul.msk.bf16.vlgmr.msra.gmra.mxu2 %vm1200_vm3, %v2397_v3  ;;  %2564 = vmatpush.bf16.msrb.mxu3 %v3417_v26  ;;  %v3571_v3 = vld [vmem:[%s4694_s30] ss:$0 sm:$0xff] }
 0x512   : > { %2565 = vmatpush.bf16.msrb.mxu3 %v3416_v29 }
 0x516   : > { %2566 = vmatpush.bf16.msrb.mxu3 %v3415_v36 }
 0x591   : > { %v2446_v30 = vpop.f32.mrf.mxu2 }
 0x592   : > { %v2447_v59 = vadd.f32 %v3568_v41, %v2446_v30 }
 0x594   : > { %v2453_v61 = vadd.f32 %v2451_v57, %v2447_v59 }
 0x596   : > { %v2457_v60 = vsel %vm1200_vm3, %v2453_v61, 0.0 }
 0x597   : > { %2458 = vadd.xlane.f32.xlu0 %v2457_v60 }
 0x599   : > { %v2448_v63 = vpop.f32.mrf.mxu2 }
 0x59a   : > { %v2449_v49 = vadd.f32 %v3568_v41, %v2448_v63 }
 0x59c   : > { %v2454_v1 = vadd.f32 %v2452_v62, %v2449_v49 }
 0x59e   : > { %v2461_v2 = vsel %vm2460_vm11, %v2454_v1, 0.0 }
 0x59f   : > { %2462 = vadd.xlane.f32.xlu2 %v2461_v2 }
 0x60a   : > { %v2459_v58 = vpop.xlane.xlu0 %2458 }
 0x60b   : > { %v2471_v14 = vmul.f32 %v4456_v12, %v2459_v58 }
 0x60d   : > { %v2473_v15 = vsub.f32 %v2453_v61, %v2471_v14 }
 0x60f   : > { %v2475_v16 = vmul.f32 %v2473_v15, %v2473_v15 }
 0x611   : > { %v2477_v10 = vsel %vm1200_vm3, %v2475_v16, 0.0 }
 0x612   : > { %v2463_v17 = vpop.xlane.xlu2 %2462  ;;  %2478 = vadd.xlane.f32.xlu1 %v2477_v10 }
 0x613   : > { %v2472_v4 = vmul.f32 %v4456_v12, %v2463_v17  ;;  %v3424_v17 = vld [vmem:[%s3971_s1 + $0x28] sm:$0xff] }
 0x615   : > { %v2474_v9 = vsub.f32 %v2454_v1, %v2472_v4  ;;  %v3426_v1 = vld [vmem:[%s3971_s1 + $0x38] sm:$0xff] }
 0x616   : > { %2730 = vmatpush.bf16.msra.mxu0 %v3426_v1 }
 0x617   : > { %v2476_v19 = vmul.f32 %v2474_v9, %v2474_v9 }
 0x619   : > { %v2480_v21 = vsel %vm2460_vm11, %v2476_v19, 0.0 }
 0x61a   : > { %2481 = vadd.xlane.f32.xlu0 %v2480_v21  ;;  %2731 = vmatpush.bf16.msra.mxu0 %v3425_v20 }
 0x61e   : > { %2732 = vmatpush.bf16.msra.mxu0 %v3424_v17 }
 0x685   : > { %v2479_v22 = vpop.xlane.xlu1 %2478 }
 0x686   : > { %v2483_v24 = vmul.f32 %v2479_v22, %v4456_v12 }
 0x688   : > { %v2485_v18 = vadd.f32 1e-05, %v2483_v24 }
 0x68a   : > { %3609 = vrsqrt.f32 %v2485_v18  ;;  %vm2493_vm14 = vweird.f32 %v2485_v18 }
 0x68d   : > { %v2482_v23 = vpop.xlane.xlu0 %2481 }
 0x68e   : > { %v2484_v31 = vmul.f32 %v2482_v23, %v4456_v12 }
 0x690   : > { %v3610_v33 = vpop.eup %3609  ;;  %v2486_v34 = vadd.f32 1e-05, %v2484_v31 }
 0x691   : > { %v2488_v35 = vmul.f32 %v3610_v33, %v2485_v18  ;;  %vm2494_vm13 = vweird.f32 %v3610_v33  ;;  %v3423_v18 = vld [vmem:[%s3971_s1 + $0x20] sm:$0xff] }
 0x692   : > { %3611 = vrsqrt.f32 %v2486_v34  ;;  %vm2495_vm15 = vmor %vm2493_vm14, %vm2494_vm13  ;;  %vm2503_vm1 = vweird.f32 %v2486_v34  ;;  %2733 = vmatpush.bf16.msra.mxu0 %v3423_v18 }
 0x693   : > { %v2489_v37 = vmul.f32 %v3610_v33, %v2488_v35  ;;  %v3422_v35 = vld [vmem:[%s3971_s1 + $0x18] sm:$0xff] }
 0x695   : > { %v2490_v0 = vmul.f32 0.5, %v2489_v37 }
 0x696   : > { %2734 = vmatpush.bf16.msra.mxu0 %v3422_v35 }
 0x697   : > { %v2491_v46 = vsub.f32 1.5, %v2490_v0 }
 0x698   : > { %v3612_v38 = vpop.eup %3611 }
 0x699   : > { %v2492_v39 = vmul.f32 %v3610_v33, %v2491_v46  ;;  %v2498_v56 = vmul.f32 %v3612_v38, %v2486_v34  ;;  %vm2504_vm0 = vweird.f32 %v3612_v38 }
 0x69a   : > { %vm2505_vm2 = vmor %vm2503_vm1, %vm2504_vm0  ;;  %vm2804_vm0 = vcmask 519168  }
 0x69b   : > { %v2499_v40 = vmul.f32 %v3612_v38, %v2498_v56  ;;  %v2496_v53 = vsel %vm2495_vm15, %v3610_v33, %v2492_v39 }
 0x69c   : > { %v2507_v52 = vmul.f32 %v2496_v53, %v2473_v15 }
 0x69d   : > { %v2500_v32 = vmul.f32 0.5, %v2499_v40  ;;  %v3420_v40 = vld [vmem:[%s3971_s1 + $0x8] sm:$0xff] }
 0x69e   : > { %v2512_v48 = vmul.f32 %v3569_v43, %v2507_v52 }
 0x69f   : > { %v2501_v42 = vsub.f32 1.5, %v2500_v32 }
 0x6a0   : > { %v4478_v27 = vadd.f32 %v3570_v47, %v2512_v48 }
 0x6a1   : > { %v2502_v44 = vmul.f32 %v3612_v38, %v2501_v42 }
 0x6a3   : > { %v2506_v45 = vsel %vm2505_vm2, %v3612_v38, %v2502_v44  ;;  %v3421_v38 = vld [vmem:[%s3971_s1 + $0x10] sm:$0xff] }
 0x6a4   : > { %v2508_v50 = vmul.f32 %v2506_v45, %v2474_v9  ;;  %2735 = vmatpush.bf16.msra.mxu0 %v3421_v38  ;;  %v3419_v45 = vld [vmem:[%s3971_s1] sm:$0xff] }
 0x6a6   : > { %v2513_v28 = vmul.f32 %v3569_v43, %v2508_v50 }
 0x6a8   : > { %v4480_v51 = vadd.f32 %v3570_v47, %v2513_v28  ;;  %2736 = vmatpush.bf16.msra.mxu0 %v3420_v40 }
 0x6aa   : > { %v2519_v54 = vpack.c.bf16 %v4480_v51, %v4478_v27 }
 0x6ac   : > { %3316 = vmatmul.msk.bf16.vlgmr.msrb.gmra.mxu3 %vm1200_vm3, %v2519_v54  ;;  %2737 = vmatpush.bf16.msra.mxu0 %v3419_v45 }
 0x72f   : > { %v2568_v55 = vpop.f32.mrf.mxu3 }
 0x730   : > { %v4490_v41 = vadd.f32 %v3571_v3, %v2568_v55 }
 0x732   : > { %v4493_v57 = vmul.f32 0.70710677, %v4490_v41 }
 0x734   : > { %v2577_v30 = vmul.f32 %v4493_v57, %v4493_v57 }
 0x736   : > { %v2578_v59 = vmin.f32 %v2577_v30, 16.0 }
 0x737   : > { %v2570_v61 = vpop.f32.mrf.mxu3 }
 0x738   : > { %v2579_v13 = vmul.f32 2.1237322e-06, %v2578_v59  ;;  %v2590_v60 = vmul.f32 3.8918573e-05, %v2578_v59  ;;  %v4497_v62 = vadd.f32 %v3571_v3, %v2570_v61 }
 0x73a   : > { %v2580_v63 = vadd.f32 0.00028619796, %v2579_v13  ;;  %v2591_v49 = vadd.f32 0.001143296, %v2590_v60  ;;  %v4501_v2 = vmul.f32 0.70710677, %v4497_v62 }
 0x73c   : > { %v2592_v5 = vmul.f32 %v2591_v49, %v2578_v59  ;;  %v2617_v6 = vmul.f32 %v4501_v2, %v4501_v2  ;;  %v2581_v7 = vmul.f32 %v2580_v63, %v2578_v59 }
 0x73e   : > { %v2593_v8 = vadd.f32 0.014752088, %v2592_v5  ;;  %v2618_v11 = vmin.f32 %v2617_v6, 16.0  ;;  %v2582_v16 = vadd.f32 0.0036580483, %v2581_v7 }
 0x740   : > { %v2594_v58 = vmul.f32 %v2593_v8, %v2578_v59  ;;  %v2619_v14 = vmul.f32 2.1237322e-06, %v2618_v11  ;;  %v2630_v15 = vmul.f32 3.8918573e-05, %v2618_v11  ;;  %v2583_v24 = vmul.f32 %v2582_v16, %v2578_v59 }
 0x742   : > { %v2595_v10 = vadd.f32 0.112945676, %v2594_v58  ;;  %v2620_v4 = vadd.f32 0.00028619796, %v2619_v14  ;;  %v2631_v9 = vadd.f32 0.001143296, %v2630_v15 }
 0x743   : > { %v2584_v33 = vadd.f32 0.05243302, %v2583_v24 }
 0x744   : > { %v2596_v19 = vmul.f32 %v2595_v10, %v2578_v59  ;;  %v2621_v21 = vmul.f32 %v2620_v4, %v2618_v11  ;;  %v2632_v22 = vmul.f32 %v2631_v9, %v2618_v11 }
 0x745   : > { %v2585_v46 = vmul.f32 %v2584_v33, %v2578_v59 }
 0x746   : > { %v2597_v25 = vadd.f32 0.4994258, %v2596_v19  ;;  %v2622_v26 = vadd.f32 0.0036580483, %v2621_v21  ;;  %v2633_v23 = vadd.f32 0.014752088, %v2632_v22 }
 0x747   : > { %v2586_v42 = vadd.f32 0.18741608, %v2585_v46  ;;  %v2573_v19 = vmul.f32 0.5, %v4490_v41  ;;  %v2574_v21 = vmul.f32 0.5, %v4497_v62 }
 0x748   : > { %v2598_v29 = vmul.f32 %v2597_v25, %v2578_v59  ;;  %v2634_v31 = vmul.f32 %v2633_v23, %v2618_v11  ;;  %v2623_v36 = vmul.f32 %v2622_v26, %v2618_v11 }
 0x749   : > { %v2587_v48 = vmul.f32 %v2586_v42, %v2578_v59 }
 0x74a   : > { %v2599_v34 = vadd.f32 1.0, %v2598_v29  ;;  %v2635_v37 = vadd.f32 0.112945676, %v2634_v31  ;;  %v2624_v39 = vadd.f32 0.05243302, %v2623_v36 }
 0x74b   : > { %v2588_v30 = vadd.f32 1.1283791, %v2587_v48 }
 0x74c   : > { %3613 = vrcp.f32 %v2599_v34  ;;  %v2636_v0 = vmul.f32 %v2635_v37, %v2618_v11  ;;  %v2625_v52 = vmul.f32 %v2624_v39, %v2618_v11  ;;  %v2611_v28 = vand.u32 2147483648, %v2599_v34 }
 0x74d   : > { %v2609_v3 = vand.u32 2147483647, %v2599_v34  ;;  %vm2605_vm5 = vweird.f32 %v2599_v34  ;;  %v2589_v5 = vmul.f32 %v2588_v30, %v4493_v57 }
 0x74e   : > { %v2637_v56 = vadd.f32 0.4994258, %v2636_v0  ;;  %v2626_v54 = vadd.f32 0.18741608, %v2625_v52  ;;  %v2612_v60 = vor.u32 1.1754944e-38, %v2611_v28 }
 0x74f   : > { %vm2610_vm7 = vcmp.eq.f32.partialorder %v2609_v3, 8.507059e+37 }
 0x750   : > { %v2638_v53 = vmul.f32 %v2637_v56, %v2618_v11  ;;  %v2627_v63 = vmul.f32 %v2626_v54, %v2618_v11 }
 0x752   : > { %v3614_v32 = vpop.eup %3613  ;;  %v2639_v44 = vadd.f32 1.0, %v2638_v53  ;;  %v2628_v6 = vadd.f32 1.1283791, %v2627_v63 }
 0x753   : > { %v2601_v43 = vmul.f32 %v3614_v32, %v2599_v34  ;;  %vm2606_vm4 = vweird.f32 %v3614_v32 }
 0x754   : > { %3615 = vrcp.f32 %v2639_v44  ;;  %vm2607_vm6 = vmor %vm2605_vm5, %vm2606_vm4  ;;  %v2651_v7 = vand.u32 2147483648, %v2639_v44  ;;  %v2649_v58 = vand.u32 2147483647, %v2639_v44  ;;  %vm2645_vm9 = vweird.f32 %v2639_v44 }
 0x755   : > { %v2602_v47 = vsub.f32 1.0, %v2601_v43  ;;  %v2629_v11 = vmul.f32 %v2628_v6, %v4501_v2  ;;  %v3572_v2 = vld [vmem:[%s4695_s21] ss:$0 sm:$0xff]  ;;  %vm2806_vm4 = vcmask 516096  }
 0x756   : > { %v2652_v15 = vor.u32 1.1754944e-38, %v2651_v7  ;;  %vm2650_vm12 = vcmp.eq.f32.partialorder %v2649_v58, 8.507059e+37 }
 0x757   : > { %v2603_v50 = vmul.f32 %v3614_v32, %v2602_v47 }
 0x759   : > { %v2604_v55 = vadd.f32 %v3614_v32, %v2603_v50 }
 0x75a   : > { %v3616_v61 = vpop.eup %3615 }
 0x75b   : > { %v2608_v13 = vsel %vm2607_vm6, %v3614_v32, %v2604_v55  ;;  %v2641_v49 = vmul.f32 %v3616_v61, %v2639_v44  ;;  %vm2646_vm8 = vweird.f32 %v3616_v61  ;;  %v3573_v55 = vld [vmem:[%s884_s19] ss:$0 sm:$0xff] }
 0x75c   : > { %v2613_v1 = vsel %vm2610_vm7, %v2612_v60, %v2608_v13  ;;  %vm2647_vm10 = vmor %vm2645_vm9, %vm2646_vm8  ;;  %v3574_v13 = vld [vmem:[%s887_s5] ss:$0 sm:$0xff] }
 0x75d   : > { %v2642_v59 = vsub.f32 1.0, %v2641_v49  ;;  %v2614_v8 = vmul.f32 %v2613_v1, %v2589_v5 }
 0x75f   : > { %v2643_v20 = vmul.f32 %v3616_v61, %v2642_v59  ;;  %v3317_v16 = vclamps-f32 %v2614_v8, 1.0 }
 0x761   : > { %v2644_v14 = vadd.f32 %v3616_v61, %v2643_v20  ;;  %v2657_v57 = vadd.f32 1.0, %v3317_v16 }
 0x763   : > { %v2648_v10 = vsel %vm2647_vm10, %v3616_v61, %v2644_v14  ;;  %v2659_v24 = vmul.f32 %v2657_v57, %v2573_v19 }
 0x764   : > { %v2653_v17 = vsel %vm2650_vm12, %v2652_v15, %v2648_v10 }
 0x765   : > { %v2654_v4 = vmul.f32 %v2653_v17, %v2629_v11 }
 0x767   : > { %v3318_v9 = vclamps-f32 %v2654_v4, 1.0 }
 0x769   : > { %v2658_v22 = vadd.f32 1.0, %v3318_v9 }
 0x76b   : > { %v2660_v25 = vmul.f32 %v2658_v22, %v2574_v21 }
 0x76d   : > { %v2661_v18 = vpack.c.bf16 %v2660_v25, %v2659_v24 }
 0x76f   : > { %2738 = vmatmul.bf16.vlgmr.msra.gmra.mxu0 %v2661_v18 }
 0x7ec   : > { %v2739_v26 = vpop.f32.mrf.mxu0 }
 0x7ed   : > { %v2740_v23 = vadd.f32 %v3572_v2, %v2739_v26 }
 0x7ef   : > { %v2744_v29 = vadd.f32 %v2740_v23, %v4478_v27 }
 0x7f1   : > { %v2748_v31 = vsel %vm1200_vm3, %v2744_v29, 0.0 }
 0x7f2   : > { %2749 = vadd.xlane.f32.xlu2 %v2748_v31 }
 0x7f4   : > { %v2741_v41 = vpop.f32.mrf.mxu0 }
 0x7f5   : > { %v2742_v33 = vadd.f32 %v3572_v2, %v2741_v41 }
 0x7f7   : > { %v2745_v62 = vadd.f32 %v2742_v33, %v4480_v51 }
 0x7f9   : > { %v2751_v34 = vsel %vm2460_vm11, %v2745_v62, 0.0 }
 0x7fa   : > { %2752 = vadd.xlane.f32.xlu0 %v2751_v34 }
 0x865   : > { %v2750_v35 = vpop.xlane.xlu2 %2749 }
 0x866   : > { %v2754_v36 = vmul.f32 %v2750_v35, %v4456_v12 }
 0x868   : > { %v2756_v37 = vsub.f32 %v2744_v29, %v2754_v36 }
 0x86a   : > { %v2758_v0 = vmul.f32 %v2756_v37, %v2756_v37 }
 0x86c   : > { %v2760_v46 = vsel %vm1200_vm3, %v2758_v0, 0.0 }
 0x86d   : > { %v2753_v38 = vpop.xlane.xlu0 %2752  ;;  %2761 = vadd.xlane.f32.xlu1 %v2760_v46 }
 0x86e   : > { %v2755_v27 = vmul.f32 %v2753_v38, %v4456_v12 }
 0x870   : > { %v2757_v39 = vsub.f32 %v2745_v62, %v2755_v27 }
 0x872   : > { %v2759_v56 = vmul.f32 %v2757_v39, %v2757_v39 }
 0x874   : > { %v2763_v40 = vsel %vm2460_vm11, %v2759_v56, 0.0 }
 0x875   : > { %2764 = vadd.xlane.f32.xlu2 %v2763_v40 }
 0x8e0   : > { %v2762_v51 = vpop.xlane.xlu1 %2761 }
 0x8e1   : > { %v2766_v53 = vmul.f32 %v2762_v51, %v4456_v12 }
 0x8e3   : > { %v2768_v32 = vadd.f32 1e-05, %v2766_v53 }
 0x8e5   : > { %3617 = vrsqrt.f32 %v2768_v32  ;;  %vm2776_vm11 = vweird.f32 %v2768_v32 }
 0x8e8   : > { %v2765_v42 = vpop.xlane.xlu2 %2764 }
 0x8e9   : > { %v2767_v43 = vmul.f32 %v2765_v42, %v4456_v12 }
 0x8eb   : > { %v3618_v52 = vpop.eup %3617  ;;  %v2769_v44 = vadd.f32 1e-05, %v2767_v43 }
 0x8ec   : > { %v2771_v45 = vmul.f32 %v3618_v52, %v2768_v32  ;;  %vm2777_vm13 = vweird.f32 %v3618_v52 }
 0x8ed   : > { %3619 = vrsqrt.f32 %v2769_v44  ;;  %vm2778_vm14 = vmor %vm2776_vm11, %vm2777_vm13  ;;  %vm2786_vm1 = vweird.f32 %v2769_v44 }
 0x8ee   : > { %v2772_v47 = vmul.f32 %v3618_v52, %v2771_v45 }
 0x8f0   : > { %v2773_v48 = vmul.f32 0.5, %v2772_v47 }
 0x8f2   : > { %v2774_v50 = vsub.f32 1.5, %v2773_v48 }
 0x8f3   : > { %v3620_v28 = vpop.eup %3619 }
 0x8f4   : > { %v2775_v54 = vmul.f32 %v3618_v52, %v2774_v50  ;;  %v2781_v3 = vmul.f32 %v3620_v28, %v2769_v44  ;;  %vm2787_vm15 = vweird.f32 %v3620_v28 }
 0x8f5   : > { %vm2788_vm2 = vmor %vm2786_vm1, %vm2787_vm15 }
 0x8f6   : > { %v2779_v30 = vsel %vm2778_vm14, %v3618_v52, %v2775_v54  ;;  %v2782_v61 = vmul.f32 %v3620_v28, %v2781_v3 }
 0x8f7   : > { %v2790_v60 = vmul.f32 %v2779_v30, %v2756_v37 }
 0x8f8   : > { %v2783_v63 = vmul.f32 0.5, %v2782_v61 }
 0x8f9   : > { %v2795_v49 = vmul.f32 %v3573_v55, %v2790_v60 }
 0x8fa   : > { %v2784_v1 = vsub.f32 1.5, %v2783_v63 }
 0x8fb   : > { %v2800_v5 = vadd.f32 %v3574_v13, %v2795_v49 }
 0x8fc   : > { %v2785_v59 = vmul.f32 %v3620_v28, %v2784_v1 }
 0x8fd   : > { %v2802_v6 = vpack.c.bf16 %v2800_v5, %v2800_v5 }
 0x8fe   : > { %v2789_v7 = vsel %vm2788_vm2, %v3620_v28, %v2785_v59 }
 0x8ff   : > { %2805 = vst.msk [vmem:[#allocation2] sm:$0xf] %vm2804_vm0, %v2802_v6  ;;  %v2791_v8 = vmul.f32 %v2789_v7, %v2757_v39 }
 0x901   : > { %v2796_v20 = vmul.f32 %v3573_v55, %v2791_v8 }
 0x903   : > { %v2801_v58 = vadd.f32 %v3574_v13, %v2796_v20  ;;  %2811 = sbr.rel (%p3351_p1) target bundleno = 2716 (0xa9c), region = 116 }
 0x905   : > { %v2803_v14 = vpack.c.bf16 %v2801_v58, %v2801_v58 }
 0x907   : > { %2807 = vst.msk [vmem:[#allocation2 + $0x4] sm:$0x1] %vm2806_vm4, %v2803_v14 }
 0x908   : > { %v2814_v15 = vsel %vm2806_vm4, %v2800_v5, 0.0  ;;  %v3430_v57 = vld [vmem:[%s4697_s24 + $0x18] sm:$0xff]  ;;  %v3429_v9 = vld [vmem:[%s4697_s24 + $0x10] sm:$0xff]  ;;  %v3428_v19 = vld [vmem:[%s4697_s24 + $0x8] sm:$0xff]  ;;  %vm2888_vm8 = vcmask 73728  }
 0x909   : > { %2815 = vadd.xlane.f32.xlu0 %v2814_v15  ;;  %2879 = vmatpush.bf16.msra.mxu0 %v3430_v57  ;;  %v3427_v21 = vld [vmem:[%s4697_s24] sm:$0xff] }
 0x90a   : > { %v2812_v41 = vld [vmem:[%s4698_s4] sm:$0x1] }
 0x90b   : > { %v2847_v37 = vld [vmem:[%s4700_s3] sm:$0x1] }
 0x90d   : > { %2880 = vmatpush.bf16.msra.mxu0 %v3429_v9 }
 0x911   : > { %2881 = vmatpush.bf16.msra.mxu0 %v3428_v19 }
 0x915   : > { %2882 = vmatpush.bf16.msra.mxu0 %v3427_v21 }
 0x97c   : > { %v2816_v16 = vpop.xlane.xlu0 %2815 }
 0x97d   : > { %v2817_v11 = vmul.f32 %v2816_v16, %v4456_v12 }
 0x97f   : > { %v2818_v10 = vsub.f32 %v2800_v5, %v2817_v11 }
 0x981   : > { %v2819_v17 = vmul.f32 %v2818_v10, %v2818_v10 }
 0x983   : > { %v2820_v4 = vsel %vm2806_vm4, %v2819_v17, 0.0 }
 0x984   : > { %2821 = vadd.xlane.f32.xlu0 %v2820_v4 }
 0x9f7   : > { %v2822_v22 = vpop.xlane.xlu0 %2821 }
 0x9f8   : > { %v2823_v24 = vmul.f32 %v2822_v22, %v4456_v12  ;;  %v2813_v12 = vld [vmem:[%s4699_s18] sm:$0x1] }
 0x9fa   : > { %v2824_v25 = vadd.f32 1e-05, %v2823_v24 }
 0x9fc   : > { %3621 = vrsqrt.f32 %v2824_v25  ;;  %vm2831_vm6 = vweird.f32 %v2824_v25 }
 0xa02   : > { %v3622_v18 = vpop.eup %3621 }
 0xa03   : > { %v2826_v2 = vmul.f32 %v3622_v18, %v2824_v25  ;;  %vm2832_vm5 = vweird.f32 %v3622_v18 }
 0xa04   : > { %vm2833_vm7 = vmor %vm2831_vm6, %vm2832_vm5 }
 0xa05   : > { %v2827_v26 = vmul.f32 %v3622_v18, %v2826_v2 }
 0xa07   : > { %v2828_v23 = vmul.f32 0.5, %v2827_v26 }
 0xa09   : > { %v2829_v29 = vsub.f32 1.5, %v2828_v23 }
 0xa0b   : > { %v2830_v31 = vmul.f32 %v3622_v18, %v2829_v29 }
 0xa0d   : > { %v2834_v33 = vsel %vm2833_vm7, %v3622_v18, %v2830_v31 }
 0xa0e   : > { %v2835_v62 = vmul.f32 %v2834_v33, %v2818_v10 }
 0xa10   : > { %v2836_v34 = vmul.f32 %v2835_v62, %v2812_v41 }
 0xa12   : > { %v2837_v35 = vadd.f32 %v2836_v34, %v2813_v12 }
 0xa14   : > { %v2838_v36 = vpack.c.bf16 %v2837_v35, %v2837_v35 }
 0xa16   : > { %3368 = vmatmul.msk.bf16.vlgmr.msra.gmra.mxu0 %vm1200_vm3, %v2838_v36 }
 0xa93   : > { %v2884_v0 = vpop.f32.mrf.mxu0 }
 0xa94   : > { %v2885_v46 = vadd.f32 %v2884_v0, %v2847_v37 }
 0xa96   : > { %2889 = vst.msk [vmem:[%s3983_s20] sm:$0x1] %vm2888_vm8, %v2885_v46 }
 0xa9b   : > { %v2886_v38 = vpop.f32.mrf.mxu0 }
 0xa9c PF: > { %s4701_s5 = sld [smem:[#allocation9_spill]]  ;;  %s2901_s25 = sshll.u32 %s3983_s20, 4  ;;  %s2902_s25 = int_to_ptr.vmem [resolvable:$true] %s2901_s25 }
 0xa9d   : > { %s4702_s22 = sld [smem:[#allocation31_spill]]  ;;  %s4704_s30 = sand.u32 1, %s3693_s28  }
 0xa9e   : > { %s2891_s1 = scalar_lea.sflag [#allocation4], %s4704_s30 }
 0xaa3   : > { %s2899_s7 = scalar_lea.hbm %s4702_s22, %s4701_s5  ;;  %s3643_s23 = scalar_lea.hbm %s4702_s22, 2 }
 0xaa4   : > { %s2903_s2 = sshll.u32 %s2899_s7, 4  ;;  %s2904_s2 = int_to_ptr.hbm [resolvable:$true] %s2903_s2 }
 0xaa5   : > { %s3637_s4 = sshra.s32 %s2904_s2, 4  ;;  %s3638_s4 = int_to_ptr.hbm [resolvable:$true] %s3637_s4 }
 0xaa6   : > { %s3639_s21 = scalar_lea.hbm %s3638_s4, 1  ;;  %p3644_p6 = scmp.lt.s32.totalorder %s3638_s4, %s4702_s22 }
 0xaa7   : > { %p3640_p2 = scmp.ne.s32.totalorder %s3638_s4, %s3639_s21  ;;  %p3645_p7 = scmp.lt.s32.totalorder %s3643_s23, %s3639_s21 }
 0xaa9   : > { %p3641_p4 = pnand %p3640_p2, %p3892_p3  ;;  %p3646_p8 = por %p3645_p7, %p3644_p6 }
 0xaab   : > { %p3642_p5 = pneg %p3641_p4 }
 0xaad   : > { %p3647_p10 = pnand %p3646_p8, %p3642_p5 }
 0xaaf   : > { %3650 = shalt.err (!%p3647_p10)
}
 0xab0   : > { %3434 = dma.vmem_to_hbm [thread:$0]  (%p3892_p3), %s2902_s25, 16, %s2904_s2, %s2891_s1  }
 0xab1 PF: > { %s4705_s20 = sld [smem:[#allocation12_spill]] }
 0xab2   : > { %s4706_s5 = sld [smem:[#allocation6_spill]] }
 0xab7   : > { %p3440_p11 = scmp.ge.s32.totalorder %s4705_s20, 2 }
 0xab8   : > { %s2915_s29 = sand.u32 1, %s4706_s5  }
 0xab9   : > { %p3437_p12 = pnand %p3440_p11, %p3902_p9  ;;  %s2916_s7 = scalar_lea.sflag [#allocation4], %s2915_s29 }
 0xabb   : > { %p3438_p13 = pneg %p3437_p12 }
 0xabd   : > { %3684 = dma.done.wait (%p3438_p13), %s2916_s7, 16  }
 0xabe   : > { %3686 = vsyncadd (%p3438_p13), %s2916_s7, 4294967280  ;;  %s35_s1 = sadd.s32 1, %s4705_s20   ;;  %s4708_s30 = sld [smem:[#allocation7_spill]] }
 0xabf   : > { %p32_p0 = scmp.ge.s32.totalorder %s35_s1, 6   ;;  %s4709_s29 = sld [smem:[#allocation17_spill]] }
 0xac0   : > { %s4710_s26 = sld [smem:[#allocation10_spill]]  ;;  %s4714_s3 = smov %s3693_s28 }
 0xac1   : > { %s4711_s4 = sld [smem:[#allocation11_spill]] }
 0xac2   : > { %s4712_s0 = sld [smem:[#allocation13_spill]]  ;;  %34 = sbr.rel (!%p32_p0) target bundleno = 19 (0x13), region = 191 }
 0xac3   : > { %s4713_s23 = sld [smem:[#allocation15_spill]] }
 0xac4   : > { %s4715_s28 = smov %s4708_s30 }
 0xac6   : > { %s4716_s30 = smov %s4710_s26 }
 0xac7   :  { %2921 = vsyncpa [#allocation4], 1 }
 0xac8   :  { %2923 = vsyncpa [#allocation4 + $0x1], 1 }

</bundles_post_ra>
